<compile_context>
chip_gen: v7x
topology: tpu7x:2x2x1
jax: 0.10.0
libtpu: 0.0.40
codegen_flags: <defaults>
</compile_context>

<pallas_src>
import functools
import math

import jax
import jax.numpy as jnp
from jax.experimental import pallas as pl
from jax.experimental.pallas import tpu as pltpu


# ----------------------------------------------------------------------------
# Fused Pallas kernel: full autoencoder forward
# ----------------------------------------------------------------------------
def _gat_ae_kernel(x_ref, masks_ref, p_ref, out_ref, *, metas, depth, n, out_channels):
    f32 = jnp.float32

    # Hoisted graph constants (host-precomputed, self-loops already folded in):
    #   adj_bias_all[h*n+i, j] = 0 if edge j->i (or i==j) else -1e30     (additive mask)
    #   eye_all[h*n+i, j]      = 1 if j == i else 0                      (diag selector)
    adj_bias_all = masks_ref[0]                                   # [hmax*n, n]
    eye_all = masks_ref[1]                                        # [hmax*n, n]

    # Hoisted head-output lane masks (one set per (heads, head_dim) config).
    lane = jax.lax.broadcasted_iota(jnp.int32, (1, 128), 1)
    mask_cache = {}
    for m in metas:
        heads, head_dim = m[3], m[4]
        if heads > 1 and (heads, head_dim) not in mask_cache:
            mask_cache[(heads, head_dim)] = [
                ((lane >= h * head_dim) & (lane < (h + 1) * head_dim)).astype(f32)
                for h in range(heads)
            ]

    def gat_layer(inputs, meta):
        w_offs, c_off, b_off, heads, head_dim, elu = meta
        hn = heads * n

        # Fused input projection(s): torch.cat([x, skip], 1) @ W folded into split matmuls.
        # All operands are 128-lane wide (zero-padded) -> plain full-tile MXU matmuls.
        g = None
        for xk, w_off in zip(inputs, w_offs):
            wk = p_ref[pl.ds(w_off, 128), :]                      # [128, 128]
            gk = jnp.dot(xk, wk, preferred_element_type=f32)      # [n, 128]
            g = gk if g is None else g + gk

        # All heads' src/dst logit pieces from ONE matmul against the packed attention
        # constants:  c_att = [C_src ; C_dst], row h*n+i of C_* holds a_{src/dst,h} in
        # head h's lane slot.  Contract over the 128 feature lanes of both operands.
        c_att = p_ref[pl.ds(c_off, 2 * hn), :]                    # [2*hn, 128]
        sd = jax.lax.dot_general(c_att, g, (((1,), (1,)), ((), ())),
                                 preferred_element_type=f32)      # [2*hn, n]
        src = sd[:hn, :]                                          # a_src_h . x'_j
        dh = sd[hn:, :]                                           # a_dst_h . x'_j (by lane j)
        dst = jnp.sum(dh * eye_all[:hn, :], axis=-1, keepdims=True)   # a_dst_h . x'_i  [hn,1]

        # Batched (all heads at once) masked softmax over incoming edges: one chain on
        # [heads*n, n] instead of `heads` serialized [n, n] chains.
        e = dst + src                                             # [hn, n]
        e = jnp.maximum(e, 0.2 * e)                               # LeakyReLU(0.2)
        e = e + adj_bias_all[:hn, :]                              # additive adjacency mask
        mrow = jnp.max(e, axis=-1, keepdims=True)                 # finite (self-loop)
        p = jnp.exp(e - mrow)                                     # masked entries -> 0
        denom = jnp.sum(p, axis=-1, keepdims=True)                # >= 1
        alpha = p * pl.reciprocal(denom, approx=True)             # EUP reciprocal

        # Aggregate all heads with ONE matmul; combine head blocks with hoisted lane masks.
        ho = jnp.dot(alpha, g, preferred_element_type=f32)        # [hn, 128]
        if heads == 1:
            out = ho
        else:
            masks = mask_cache[(heads, head_dim)]
            out = ho[0:n, :] * masks[0]
            for h in range(1, heads):                             # aligned sublane slices
                out = out + ho[h * n:(h + 1) * n, :] * masks[h]

        out = out + p_ref[pl.ds(b_off, n), :]                     # bias (row-replicated)
        if elu:                                                   # ELU(alpha=1)
            out = jnp.where(out > 0.0, out,
                            jnp.exp(jnp.minimum(out, 0.0)) - 1.0)
        return out                                                # [n, 128], zero beyond d

    x = x_ref[...]                                                # [n, 128] lane-dense input
    x_enc = []
    for i in range(depth):                                        # encoder
        x = gat_layer([x], metas[i])
        x_enc.append(x)                                           # stays in VMEM/vregs
    for i in range(depth):                                        # skip-concat decoder
        x = gat_layer([x, x_enc[depth - 1 - i]], metas[depth + i])
    out_ref[...] = x[:, :out_channels]                            # tiny masked store is fine


def gat_autoencoder_forward(x, graph_masks, params, *, metas, depth, n, out_channels):
    in_ch = x.shape[1]
    x_pad = jnp.pad(x, ((0, 0), (0, 128 - in_ch)))                # lane-dense [n, 128]

    # Advisory cost estimate so XLA can schedule neighbors around the tiny custom call.
    flops, trans = 0, 0
    for (w_offs, _c, _b, heads, _hd, elu) in metas:
        hn = heads * n
        flops += len(w_offs) * 2 * n * 128 * 128                  # projections
        flops += 2 * (2 * hn) * 128 * n                           # attention logits
        flops += 2 * hn * n * 128                                 # aggregation
        trans += hn * n + hn                                      # softmax exp + reciprocal
        if elu:
            trans += n * 128
    bytes_accessed = 4 * (n * 128 + graph_masks.size + params.size + n * out_channels)

    kernel = functools.partial(_gat_ae_kernel, metas=metas, depth=depth,
                               n=n, out_channels=out_channels)
    vmem = pl.BlockSpec(memory_space=pltpu.MemorySpace.VMEM)
    return pl.pallas_call(
        kernel,
        out_shape=jax.ShapeDtypeStruct((n, out_channels), jnp.float32),
        in_specs=[vmem, vmem, vmem],
        out_specs=vmem,
        cost_estimate=pl.CostEstimate(flops=flops, transcendentals=trans,
                                      bytes_accessed=bytes_accessed),
    )(x_pad, graph_masks, params)


# ----------------------------------------------------------------------------
# Host-side parameter / graph-constant packing
# ----------------------------------------------------------------------------
def pack_gat_params(key, layer_defs, n):
    """Pack every layer's (W, att_src, att_dst, bias) into ONE [rows, 128] buffer.

    Per layer (all row counts multiples of 8, full 128-lane width, zero padded):
      - one [128, 128] W block per summed input (current x, optional skip tensor)
      - [2*heads*n, 128] attention block  [C_src ; C_dst]
      - [n, 128] row-replicated bias
    Also returns the raw per-layer params for a pure-JAX reference check.
    """
    assert n % 8 == 0
    blocks, metas, raw = [], [], []
    offset = 0
    keys = jax.random.split(key, len(layer_defs))
    for ld, k in zip(layer_defs, keys):
        heads, head_dim = ld["heads"], ld["head_dim"]
        d = heads * head_dim
        f_total = sum(ld["f_ins"])
        kw, ka1, ka2, kb = jax.random.split(k, 4)
        W = jax.random.normal(kw, (f_total, d), jnp.float32) / math.sqrt(f_total)
        att_src = jax.random.normal(ka1, (heads, head_dim), jnp.float32) / math.sqrt(head_dim)
        att_dst = jax.random.normal(ka2, (heads, head_dim), jnp.float32) / math.sqrt(head_dim)
        bias = 0.1 * jax.random.normal(kb, (d,), jnp.float32)
        raw.append(dict(W=W, att_src=att_src, att_dst=att_dst, bias=bias,
                        heads=heads, head_dim=head_dim, elu=bool(ld["elu"])))

        # W blocks (skip-concat fold): rows of the stacked [f_total, d] weight, padded.
        w_offs, r0 = [], 0
        for f in ld["f_ins"]:
            blk = jnp.zeros((128, 128), jnp.float32).at[:f, :d].set(W[r0:r0 + f])
            w_offs.append(offset)
            blocks.append(blk)
            offset += 128
            r0 += f

        # Attention constants: row h*n+i holds a_{src/dst,h} in head h's lane slot.
        c_src = jnp.zeros((heads * n, 128), jnp.float32)
        c_dst = jnp.zeros((heads * n, 128), jnp.float32)
        for h in range(heads):
            c_src = c_src.at[h * n:(h + 1) * n, h * head_dim:(h + 1) * head_dim].set(
                jnp.broadcast_to(att_src[h], (n, head_dim)))
            c_dst = c_dst.at[h * n:(h + 1) * n, h * head_dim:(h + 1) * head_dim].set(
                jnp.broadcast_to(att_dst[h], (n, head_dim)))
        c_off = offset
        blocks.append(jnp.concatenate([c_src, c_dst], axis=0))
        offset += 2 * heads * n

        # Bias, row-replicated so the kernel adds it with no broadcast / sub-tile load.
        b_blk = jnp.zeros((n, 128), jnp.float32).at[:, :d].set(jnp.broadcast_to(bias, (n, d)))
        b_off = offset
        blocks.append(b_blk)
        offset += n

        metas.append((tuple(w_offs), c_off, b_off, heads, head_dim, bool(ld["elu"])))
    return jnp.concatenate(blocks, axis=0), tuple(metas), raw


def build_graph_masks(adj, n, hmax):
    """[2, hmax*n, n]: tiled additive adjacency bias (self-loops folded) + tiled identity."""
    eye = jnp.eye(n, dtype=jnp.float32)
    adj_sl = jnp.maximum(adj, eye)                                # add_self_loops=True
    bias = jnp.where(adj_sl > 0.0, 0.0, -1e30).astype(jnp.float32)
    bias_t = jnp.concatenate([bias] * hmax, axis=0)
    eye_t = jnp.concatenate([eye] * hmax, axis=0)
    return jnp.stack([bias_t, eye_t], axis=0)


# ----------------------------------------------------------------------------
# Pure-JAX reference (dense GATConv) for correctness validation
# ----------------------------------------------------------------------------
def reference_forward(x, adj, raw, depth, n):
    eye = jnp.eye(n, dtype=jnp.float32)
    bias_mask = jnp.where(jnp.maximum(adj, eye) > 0.0, 0.0, -1e30)

    def gat(x_in, p):
        heads, F = p["heads"], p["head_dim"]
        gh = (x_in @ p["W"]).reshape(n, heads, F)
        s_src = jnp.einsum("nhf,hf->nh", gh, p["att_src"])
        s_dst = jnp.einsum("nhf,hf->nh", gh, p["att_dst"])
        e = s_dst[:, None, :] + s_src[None, :, :]                 # [i, j, h]
        e = jnp.where(e > 0, e, 0.2 * e)
        e = e + bias_mask[:, :, None]
        a = jax.nn.softmax(e, axis=1)
        out = jnp.einsum("ijh,jhf->ihf", a, gh).reshape(n, heads * F) + p["bias"]
        if p["elu"]:
            out = jnp.where(out > 0, out, jnp.exp(jnp.minimum(out, 0.0)) - 1.0)
        return out

    h = x
    skips = []
    for i in range(depth):
        h = gat(h, raw[i])
        skips.append(h)
    for i in range(depth):
        h = gat(jnp.concatenate([h, skips[depth - 1 - i]], axis=1), raw[depth + i])
    return h


# ----------------------------------------------------------------------------
# Main
# ----------------------------------------------------------------------------
if __name__ == "__main__":
    # GraphAttentionAutoEncoder(in_channels=4, hidden_dim=32, out_channels=4,
    #                           depth=2, pool_ratios=[1.0], heads=4)
    N = 16
    IN_CHANNELS = 4
    HIDDEN_DIM = 32
    OUT_CHANNELS = 4
    DEPTH = 2
    HEADS = 4
    HEAD_DIM = HIDDEN_DIM // HEADS

    key = jax.random.PRNGKey(0)
    k_x, k_p = jax.random.split(key)

    # node features
    x = jax.random.normal(k_x, (N, IN_CHANNELS), jnp.float32)

    # bidirectional ring graph; adj[target, source] = 1 (PyG edge_index convention)
    src = jnp.concatenate([jnp.arange(N), (jnp.arange(N) + 1) % N])
    dst = jnp.concatenate([(jnp.arange(N) + 1) % N, jnp.arange(N)])
    adj = jnp.zeros((N, N), jnp.float32).at[dst, src].set(1.0)
    # `batch` (all zeros, single graph) is only consumed by TopKPooling, which is disabled.

    # layer schedule: encoder, then skip-concat decoder (final layer heads=1, concat=False)
    layer_defs = []
    f_prev = IN_CHANNELS
    for _ in range(DEPTH):
        layer_defs.append(dict(f_ins=(f_prev,), heads=HEADS, head_dim=HEAD_DIM, elu=True))
        f_prev = HIDDEN_DIM
    for _ in range(DEPTH - 1):
        layer_defs.append(dict(f_ins=(HIDDEN_DIM, HIDDEN_DIM), heads=HEADS,
                               head_dim=HEAD_DIM, elu=True))
    layer_defs.append(dict(f_ins=(HIDDEN_DIM, HIDDEN_DIM), heads=1,
                           head_dim=OUT_CHANNELS, elu=False))

    params, metas, raw = pack_gat_params(k_p, layer_defs, N)
    hmax = max(m[3] for m in metas)
    graph_masks = build_graph_masks(adj, N, hmax)

    fwd = jax.jit(functools.partial(
        gat_autoencoder_forward,
        metas=metas, depth=DEPTH, n=N, out_channels=OUT_CHANNELS))

    out = jax.block_until_ready(fwd(x, graph_masks, params))

    assert out.shape == (N, OUT_CHANNELS), out.shape
    assert bool(jnp.all(jnp.isfinite(out)))

    ref = reference_forward(x, adj, raw, DEPTH, N)
    max_err = float(jnp.max(jnp.abs(out - ref)))
    assert bool(jnp.allclose(out, ref, rtol=5e-2, atol=5e-2)), max_err
    print("KERNEL_OK")
</pallas_src>

<mosaic_0001>
module attributes {stable_mosaic.version = 11 : i64} {
  func.func @_gat_ae_kernel(%arg0: memref<16x128xf32, #tpu.memory_space<vmem>>, %arg1: memref<2x64x16xf32, #tpu.memory_space<vmem>>, %arg2: memref<1248x128xf32, #tpu.memory_space<vmem>>, %arg3: memref<16x4xf32, #tpu.memory_space<vmem>>) attributes {dimension_semantics = [], scalar_prefetch = 0 : i64, scratch_operands = 0 : i64, tpu.core_type = #tpu.core_type<tc>} {
    %c0 = arith.constant 0 : index
    %c0_0 = arith.constant 0 : index
    %c0_1 = arith.constant 0 : index
    %0 = vector.load %arg1[%c0, %c0_0, %c0_1] : memref<2x64x16xf32, #tpu.memory_space<vmem>>, vector<1x64x16xf32>
    %1 = vector.shape_cast %0 : vector<1x64x16xf32> to vector<64x16xf32>
    %c1 = arith.constant 1 : index
    %c0_2 = arith.constant 0 : index
    %c0_3 = arith.constant 0 : index
    %2 = vector.load %arg1[%c1, %c0_2, %c0_3] : memref<2x64x16xf32, #tpu.memory_space<vmem>>, vector<1x64x16xf32>
    %3 = vector.shape_cast %2 : vector<1x64x16xf32> to vector<64x16xf32>
    %4 = tpu.iota {dimensions = array<i32: 1>} : vector<1x128xi32>
    %c0_i32 = arith.constant 0 : i32
    %5 = vector.broadcast %c0_i32 : i32 to vector<1x128xi32>
    %6 = arith.cmpi sge, %4, %5 : vector<1x128xi32>
    %c8_i32 = arith.constant 8 : i32
    %7 = vector.broadcast %c8_i32 : i32 to vector<1x128xi32>
    %8 = arith.cmpi slt, %4, %7 : vector<1x128xi32>
    %9 = arith.andi %6, %8 : vector<1x128xi1>
    %10 = arith.extui %9 : vector<1x128xi1> to vector<1x128xi32>
    %11 = arith.sitofp %10 : vector<1x128xi32> to vector<1x128xf32>
    %c8_i32_4 = arith.constant 8 : i32
    %12 = vector.broadcast %c8_i32_4 : i32 to vector<1x128xi32>
    %13 = arith.cmpi sge, %4, %12 : vector<1x128xi32>
    %c16_i32 = arith.constant 16 : i32
    %14 = vector.broadcast %c16_i32 : i32 to vector<1x128xi32>
    %15 = arith.cmpi slt, %4, %14 : vector<1x128xi32>
    %16 = arith.andi %13, %15 : vector<1x128xi1>
    %17 = arith.extui %16 : vector<1x128xi1> to vector<1x128xi32>
    %18 = arith.sitofp %17 : vector<1x128xi32> to vector<1x128xf32>
    %c16_i32_5 = arith.constant 16 : i32
    %19 = vector.broadcast %c16_i32_5 : i32 to vector<1x128xi32>
    %20 = arith.cmpi sge, %4, %19 : vector<1x128xi32>
    %c24_i32 = arith.constant 24 : i32
    %21 = vector.broadcast %c24_i32 : i32 to vector<1x128xi32>
    %22 = arith.cmpi slt, %4, %21 : vector<1x128xi32>
    %23 = arith.andi %20, %22 : vector<1x128xi1>
    %24 = arith.extui %23 : vector<1x128xi1> to vector<1x128xi32>
    %25 = arith.sitofp %24 : vector<1x128xi32> to vector<1x128xf32>
    %c24_i32_6 = arith.constant 24 : i32
    %26 = vector.broadcast %c24_i32_6 : i32 to vector<1x128xi32>
    %27 = arith.cmpi sge, %4, %26 : vector<1x128xi32>
    %c32_i32 = arith.constant 32 : i32
    %28 = vector.broadcast %c32_i32 : i32 to vector<1x128xi32>
    %29 = arith.cmpi slt, %4, %28 : vector<1x128xi32>
    %30 = arith.andi %27, %29 : vector<1x128xi1>
    %31 = arith.extui %30 : vector<1x128xi1> to vector<1x128xi32>
    %32 = arith.sitofp %31 : vector<1x128xi32> to vector<1x128xf32>
    %c0_7 = arith.constant 0 : index
    %c0_8 = arith.constant 0 : index
    %33 = vector.load %arg0[%c0_7, %c0_8] : memref<16x128xf32, #tpu.memory_space<vmem>>, vector<16x128xf32>
    %c0_9 = arith.constant 0 : index
    %c0_10 = arith.constant 0 : index
    %34 = vector.load %arg2[%c0_9, %c0_10] : memref<1248x128xf32, #tpu.memory_space<vmem>>, vector<128x128xf32>
    %cst = arith.constant dense<0.000000e+00> : vector<16x128xf32>
    %35 = tpu.matmul %33, %34, %cst {dimension_numbers = #tpu.dot_dimension_numbers<[1], [0], [0], [1], [0, 0, 1, 1], [], []>} : vector<16x128xf32>, vector<128x128xf32>, vector<16x128xf32> -> vector<16x128xf32>
    %c128 = arith.constant 128 : index
    %c0_11 = arith.constant 0 : index
    %36 = vector.load %arg2[%c128, %c0_11] : memref<1248x128xf32, #tpu.memory_space<vmem>>, vector<128x128xf32>
    %cst_12 = arith.constant dense<0.000000e+00> : vector<128x16xf32>
    %37 = tpu.matmul %36, %35, %cst_12 {dimension_numbers = #tpu.dot_dimension_numbers<[1], [1], [0], [0], [0, 0, 1, 0], [], []>} : vector<128x128xf32>, vector<16x128xf32>, vector<128x16xf32> -> vector<128x16xf32>
    %38 = vector.extract_strided_slice %37 {offsets = [0, 0], sizes = [64, 16], strides = [1, 1]} : vector<128x16xf32> to vector<64x16xf32>
    %39 = vector.extract_strided_slice %37 {offsets = [64, 0], sizes = [64, 16], strides = [1, 1]} : vector<128x16xf32> to vector<64x16xf32>
    %40 = arith.mulf %39, %3 : vector<64x16xf32>
    %cst_13 = arith.constant dense<0.000000e+00> : vector<64xf32>
    %41 = vector.multi_reduction <add>, %40, %cst_13 [1] : vector<64x16xf32> to vector<64xf32>
    %42 = vector.shape_cast %41 : vector<64xf32> to vector<64x1xf32>
    %43 = vector.broadcast %42 : vector<64x1xf32> to vector<64x16xf32>
    %44 = arith.addf %43, %38 : vector<64x16xf32>
    %cst_14 = arith.constant 2.000000e-01 : f32
    %45 = vector.broadcast %cst_14 : f32 to vector<64x16xf32>
    %46 = arith.mulf %45, %44 : vector<64x16xf32>
    %47 = arith.maximumf %44, %46 : vector<64x16xf32>
    %48 = arith.addf %47, %1 : vector<64x16xf32>
    %cst_15 = arith.constant dense<0xFF800000> : vector<64xf32>
    %49 = vector.multi_reduction <maximumf>, %48, %cst_15 [1] : vector<64x16xf32> to vector<64xf32>
    %50 = vector.shape_cast %49 : vector<64xf32> to vector<64x1xf32>
    %51 = vector.broadcast %50 : vector<64x1xf32> to vector<64x16xf32>
    %52 = arith.subf %48, %51 : vector<64x16xf32>
    %53 = math.exp %52 : vector<64x16xf32>
    %cst_16 = arith.constant dense<0.000000e+00> : vector<64xf32>
    %54 = vector.multi_reduction <add>, %53, %cst_16 [1] : vector<64x16xf32> to vector<64xf32>
    %55 = vector.shape_cast %54 : vector<64xf32> to vector<64x1xf32>
    %56 = tpu.reciprocal %55 {approx = true} : vector<64x1xf32> -> vector<64x1xf32>
    %57 = vector.broadcast %56 : vector<64x1xf32> to vector<64x16xf32>
    %58 = arith.mulf %53, %57 : vector<64x16xf32>
    %cst_17 = arith.constant dense<0.000000e+00> : vector<64x128xf32>
    %59 = tpu.matmul %58, %35, %cst_17 {dimension_numbers = #tpu.dot_dimension_numbers<[1], [0], [0], [1], [0, 0, 1, 1], [], []>} : vector<64x16xf32>, vector<16x128xf32>, vector<64x128xf32> -> vector<64x128xf32>
    %60 = vector.extract_strided_slice %59 {offsets = [0, 0], sizes = [16, 128], strides = [1, 1]} : vector<64x128xf32> to vector<16x128xf32>
    %61 = vector.broadcast %11 : vector<1x128xf32> to vector<16x128xf32>
    %62 = arith.mulf %60, %61 : vector<16x128xf32>
    %63 = vector.extract_strided_slice %59 {offsets = [16, 0], sizes = [16, 128], strides = [1, 1]} : vector<64x128xf32> to vector<16x128xf32>
    %64 = vector.broadcast %18 : vector<1x128xf32> to vector<16x128xf32>
    %65 = arith.mulf %63, %64 : vector<16x128xf32>
    %66 = arith.addf %62, %65 : vector<16x128xf32>
    %67 = vector.extract_strided_slice %59 {offsets = [32, 0], sizes = [16, 128], strides = [1, 1]} : vector<64x128xf32> to vector<16x128xf32>
    %68 = vector.broadcast %25 : vector<1x128xf32> to vector<16x128xf32>
    %69 = arith.mulf %67, %68 : vector<16x128xf32>
    %70 = arith.addf %66, %69 : vector<16x128xf32>
    %71 = vector.extract_strided_slice %59 {offsets = [48, 0], sizes = [16, 128], strides = [1, 1]} : vector<64x128xf32> to vector<16x128xf32>
    %72 = vector.broadcast %32 : vector<1x128xf32> to vector<16x128xf32>
    %73 = arith.mulf %71, %72 : vector<16x128xf32>
    %74 = arith.addf %70, %73 : vector<16x128xf32>
    %c256 = arith.constant 256 : index
    %c0_18 = arith.constant 0 : index
    %75 = vector.load %arg2[%c256, %c0_18] : memref<1248x128xf32, #tpu.memory_space<vmem>>, vector<16x128xf32>
    %76 = arith.addf %74, %75 : vector<16x128xf32>
    %cst_19 = arith.constant 0.000000e+00 : f32
    %77 = vector.broadcast %cst_19 : f32 to vector<16x128xf32>
    %78 = arith.cmpf ogt, %76, %77 : vector<16x128xf32>
    %cst_20 = arith.constant 0.000000e+00 : f32
    %79 = vector.broadcast %cst_20 : f32 to vector<16x128xf32>
    %80 = arith.minimumf %76, %79 : vector<16x128xf32>
    %81 = math.exp %80 : vector<16x128xf32>
    %cst_21 = arith.constant 1.000000e+00 : f32
    %82 = vector.broadcast %cst_21 : f32 to vector<16x128xf32>
    %83 = arith.subf %81, %82 : vector<16x128xf32>
    %84 = arith.select %78, %76, %83 : vector<16x128xi1>, vector<16x128xf32>
    %c272 = arith.constant 272 : index
    %c0_22 = arith.constant 0 : index
    %85 = vector.load %arg2[%c272, %c0_22] : memref<1248x128xf32, #tpu.memory_space<vmem>>, vector<128x128xf32>
    %cst_23 = arith.constant dense<0.000000e+00> : vector<16x128xf32>
    %86 = tpu.matmul %84, %85, %cst_23 {dimension_numbers = #tpu.dot_dimension_numbers<[1], [0], [0], [1], [0, 0, 1, 1], [], []>} : vector<16x128xf32>, vector<128x128xf32>, vector<16x128xf32> -> vector<16x128xf32>
    %c400 = arith.constant 400 : index
    %c0_24 = arith.constant 0 : index
    %87 = vector.load %arg2[%c400, %c0_24] : memref<1248x128xf32, #tpu.memory_space<vmem>>, vector<128x128xf32>
    %cst_25 = arith.constant dense<0.000000e+00> : vector<128x16xf32>
    %88 = tpu.matmul %87, %86, %cst_25 {dimension_numbers = #tpu.dot_dimension_numbers<[1], [1], [0], [0], [0, 0, 1, 0], [], []>} : vector<128x128xf32>, vector<16x128xf32>, vector<128x16xf32> -> vector<128x16xf32>
    %89 = vector.extract_strided_slice %88 {offsets = [0, 0], sizes = [64, 16], strides = [1, 1]} : vector<128x16xf32> to vector<64x16xf32>
    %90 = vector.extract_strided_slice %88 {offsets = [64, 0], sizes = [64, 16], strides = [1, 1]} : vector<128x16xf32> to vector<64x16xf32>
    %91 = arith.mulf %90, %3 : vector<64x16xf32>
    %cst_26 = arith.constant dense<0.000000e+00> : vector<64xf32>
    %92 = vector.multi_reduction <add>, %91, %cst_26 [1] : vector<64x16xf32> to vector<64xf32>
    %93 = vector.shape_cast %92 : vector<64xf32> to vector<64x1xf32>
    %94 = vector.broadcast %93 : vector<64x1xf32> to vector<64x16xf32>
    %95 = arith.addf %94, %89 : vector<64x16xf32>
    %cst_27 = arith.constant 2.000000e-01 : f32
    %96 = vector.broadcast %cst_27 : f32 to vector<64x16xf32>
    %97 = arith.mulf %96, %95 : vector<64x16xf32>
    %98 = arith.maximumf %95, %97 : vector<64x16xf32>
    %99 = arith.addf %98, %1 : vector<64x16xf32>
    %cst_28 = arith.constant dense<0xFF800000> : vector<64xf32>
    %100 = vector.multi_reduction <maximumf>, %99, %cst_28 [1] : vector<64x16xf32> to vector<64xf32>
    %101 = vector.shape_cast %100 : vector<64xf32> to vector<64x1xf32>
    %102 = vector.broadcast %101 : vector<64x1xf32> to vector<64x16xf32>
    %103 = arith.subf %99, %102 : vector<64x16xf32>
    %104 = math.exp %103 : vector<64x16xf32>
    %cst_29 = arith.constant dense<0.000000e+00> : vector<64xf32>
    %105 = vector.multi_reduction <add>, %104, %cst_29 [1] : vector<64x16xf32> to vector<64xf32>
    %106 = vector.shape_cast %105 : vector<64xf32> to vector<64x1xf32>
    %107 = tpu.reciprocal %106 {approx = true} : vector<64x1xf32> -> vector<64x1xf32>
    %108 = vector.broadcast %107 : vector<64x1xf32> to vector<64x16xf32>
    %109 = arith.mulf %104, %108 : vector<64x16xf32>
    %cst_30 = arith.constant dense<0.000000e+00> : vector<64x128xf32>
    %110 = tpu.matmul %109, %86, %cst_30 {dimension_numbers = #tpu.dot_dimension_numbers<[1], [0], [0], [1], [0, 0, 1, 1], [], []>} : vector<64x16xf32>, vector<16x128xf32>, vector<64x128xf32> -> vector<64x128xf32>
    %111 = vector.extract_strided_slice %110 {offsets = [0, 0], sizes = [16, 128], strides = [1, 1]} : vector<64x128xf32> to vector<16x128xf32>
    %112 = vector.broadcast %11 : vector<1x128xf32> to vector<16x128xf32>
    %113 = arith.mulf %111, %112 : vector<16x128xf32>
    %114 = vector.extract_strided_slice %110 {offsets = [16, 0], sizes = [16, 128], strides = [1, 1]} : vector<64x128xf32> to vector<16x128xf32>
    %115 = vector.broadcast %18 : vector<1x128xf32> to vector<16x128xf32>
    %116 = arith.mulf %114, %115 : vector<16x128xf32>
    %117 = arith.addf %113, %116 : vector<16x128xf32>
    %118 = vector.extract_strided_slice %110 {offsets = [32, 0], sizes = [16, 128], strides = [1, 1]} : vector<64x128xf32> to vector<16x128xf32>
    %119 = vector.broadcast %25 : vector<1x128xf32> to vector<16x128xf32>
    %120 = arith.mulf %118, %119 : vector<16x128xf32>
    %121 = arith.addf %117, %120 : vector<16x128xf32>
    %122 = vector.extract_strided_slice %110 {offsets = [48, 0], sizes = [16, 128], strides = [1, 1]} : vector<64x128xf32> to vector<16x128xf32>
    %123 = vector.broadcast %32 : vector<1x128xf32> to vector<16x128xf32>
    %124 = arith.mulf %122, %123 : vector<16x128xf32>
    %125 = arith.addf %121, %124 : vector<16x128xf32>
    %c528 = arith.constant 528 : index
    %c0_31 = arith.constant 0 : index
    %126 = vector.load %arg2[%c528, %c0_31] : memref<1248x128xf32, #tpu.memory_space<vmem>>, vector<16x128xf32>
    %127 = arith.addf %125, %126 : vector<16x128xf32>
    %cst_32 = arith.constant 0.000000e+00 : f32
    %128 = vector.broadcast %cst_32 : f32 to vector<16x128xf32>
    %129 = arith.cmpf ogt, %127, %128 : vector<16x128xf32>
    %cst_33 = arith.constant 0.000000e+00 : f32
    %130 = vector.broadcast %cst_33 : f32 to vector<16x128xf32>
    %131 = arith.minimumf %127, %130 : vector<16x128xf32>
    %132 = math.exp %131 : vector<16x128xf32>
    %cst_34 = arith.constant 1.000000e+00 : f32
    %133 = vector.broadcast %cst_34 : f32 to vector<16x128xf32>
    %134 = arith.subf %132, %133 : vector<16x128xf32>
    %135 = arith.select %129, %127, %134 : vector<16x128xi1>, vector<16x128xf32>
    %c544 = arith.constant 544 : index
    %c0_35 = arith.constant 0 : index
    %136 = vector.load %arg2[%c544, %c0_35] : memref<1248x128xf32, #tpu.memory_space<vmem>>, vector<128x128xf32>
    %cst_36 = arith.constant dense<0.000000e+00> : vector<16x128xf32>
    %137 = tpu.matmul %135, %136, %cst_36 {dimension_numbers = #tpu.dot_dimension_numbers<[1], [0], [0], [1], [0, 0, 1, 1], [], []>} : vector<16x128xf32>, vector<128x128xf32>, vector<16x128xf32> -> vector<16x128xf32>
    %c672 = arith.constant 672 : index
    %c0_37 = arith.constant 0 : index
    %138 = vector.load %arg2[%c672, %c0_37] : memref<1248x128xf32, #tpu.memory_space<vmem>>, vector<128x128xf32>
    %cst_38 = arith.constant dense<0.000000e+00> : vector<16x128xf32>
    %139 = tpu.matmul %135, %138, %cst_38 {dimension_numbers = #tpu.dot_dimension_numbers<[1], [0], [0], [1], [0, 0, 1, 1], [], []>} : vector<16x128xf32>, vector<128x128xf32>, vector<16x128xf32> -> vector<16x128xf32>
    %140 = arith.addf %137, %139 : vector<16x128xf32>
    %c800 = arith.constant 800 : index
    %c0_39 = arith.constant 0 : index
    %141 = vector.load %arg2[%c800, %c0_39] : memref<1248x128xf32, #tpu.memory_space<vmem>>, vector<128x128xf32>
    %cst_40 = arith.constant dense<0.000000e+00> : vector<128x16xf32>
    %142 = tpu.matmul %141, %140, %cst_40 {dimension_numbers = #tpu.dot_dimension_numbers<[1], [1], [0], [0], [0, 0, 1, 0], [], []>} : vector<128x128xf32>, vector<16x128xf32>, vector<128x16xf32> -> vector<128x16xf32>
    %143 = vector.extract_strided_slice %142 {offsets = [0, 0], sizes = [64, 16], strides = [1, 1]} : vector<128x16xf32> to vector<64x16xf32>
    %144 = vector.extract_strided_slice %142 {offsets = [64, 0], sizes = [64, 16], strides = [1, 1]} : vector<128x16xf32> to vector<64x16xf32>
    %145 = arith.mulf %144, %3 : vector<64x16xf32>
    %cst_41 = arith.constant dense<0.000000e+00> : vector<64xf32>
    %146 = vector.multi_reduction <add>, %145, %cst_41 [1] : vector<64x16xf32> to vector<64xf32>
    %147 = vector.shape_cast %146 : vector<64xf32> to vector<64x1xf32>
    %148 = vector.broadcast %147 : vector<64x1xf32> to vector<64x16xf32>
    %149 = arith.addf %148, %143 : vector<64x16xf32>
    %cst_42 = arith.constant 2.000000e-01 : f32
    %150 = vector.broadcast %cst_42 : f32 to vector<64x16xf32>
    %151 = arith.mulf %150, %149 : vector<64x16xf32>
    %152 = arith.maximumf %149, %151 : vector<64x16xf32>
    %153 = arith.addf %152, %1 : vector<64x16xf32>
    %cst_43 = arith.constant dense<0xFF800000> : vector<64xf32>
    %154 = vector.multi_reduction <maximumf>, %153, %cst_43 [1] : vector<64x16xf32> to vector<64xf32>
    %155 = vector.shape_cast %154 : vector<64xf32> to vector<64x1xf32>
    %156 = vector.broadcast %155 : vector<64x1xf32> to vector<64x16xf32>
    %157 = arith.subf %153, %156 : vector<64x16xf32>
    %158 = math.exp %157 : vector<64x16xf32>
    %cst_44 = arith.constant dense<0.000000e+00> : vector<64xf32>
    %159 = vector.multi_reduction <add>, %158, %cst_44 [1] : vector<64x16xf32> to vector<64xf32>
    %160 = vector.shape_cast %159 : vector<64xf32> to vector<64x1xf32>
    %161 = tpu.reciprocal %160 {approx = true} : vector<64x1xf32> -> vector<64x1xf32>
    %162 = vector.broadcast %161 : vector<64x1xf32> to vector<64x16xf32>
    %163 = arith.mulf %158, %162 : vector<64x16xf32>
    %cst_45 = arith.constant dense<0.000000e+00> : vector<64x128xf32>
    %164 = tpu.matmul %163, %140, %cst_45 {dimension_numbers = #tpu.dot_dimension_numbers<[1], [0], [0], [1], [0, 0, 1, 1], [], []>} : vector<64x16xf32>, vector<16x128xf32>, vector<64x128xf32> -> vector<64x128xf32>
    %165 = vector.extract_strided_slice %164 {offsets = [0, 0], sizes = [16, 128], strides = [1, 1]} : vector<64x128xf32> to vector<16x128xf32>
    %166 = vector.broadcast %11 : vector<1x128xf32> to vector<16x128xf32>
    %167 = arith.mulf %165, %166 : vector<16x128xf32>
    %168 = vector.extract_strided_slice %164 {offsets = [16, 0], sizes = [16, 128], strides = [1, 1]} : vector<64x128xf32> to vector<16x128xf32>
    %169 = vector.broadcast %18 : vector<1x128xf32> to vector<16x128xf32>
    %170 = arith.mulf %168, %169 : vector<16x128xf32>
    %171 = arith.addf %167, %170 : vector<16x128xf32>
    %172 = vector.extract_strided_slice %164 {offsets = [32, 0], sizes = [16, 128], strides = [1, 1]} : vector<64x128xf32> to vector<16x128xf32>
    %173 = vector.broadcast %25 : vector<1x128xf32> to vector<16x128xf32>
    %174 = arith.mulf %172, %173 : vector<16x128xf32>
    %175 = arith.addf %171, %174 : vector<16x128xf32>
    %176 = vector.extract_strided_slice %164 {offsets = [48, 0], sizes = [16, 128], strides = [1, 1]} : vector<64x128xf32> to vector<16x128xf32>
    %177 = vector.broadcast %32 : vector<1x128xf32> to vector<16x128xf32>
    %178 = arith.mulf %176, %177 : vector<16x128xf32>
    %179 = arith.addf %175, %178 : vector<16x128xf32>
    %c928 = arith.constant 928 : index
    %c0_46 = arith.constant 0 : index
    %180 = vector.load %arg2[%c928, %c0_46] : memref<1248x128xf32, #tpu.memory_space<vmem>>, vector<16x128xf32>
    %181 = arith.addf %179, %180 : vector<16x128xf32>
    %cst_47 = arith.constant 0.000000e+00 : f32
    %182 = vector.broadcast %cst_47 : f32 to vector<16x128xf32>
    %183 = arith.cmpf ogt, %181, %182 : vector<16x128xf32>
    %cst_48 = arith.constant 0.000000e+00 : f32
    %184 = vector.broadcast %cst_48 : f32 to vector<16x128xf32>
    %185 = arith.minimumf %181, %184 : vector<16x128xf32>
    %186 = math.exp %185 : vector<16x128xf32>
    %cst_49 = arith.constant 1.000000e+00 : f32
    %187 = vector.broadcast %cst_49 : f32 to vector<16x128xf32>
    %188 = arith.subf %186, %187 : vector<16x128xf32>
    %189 = arith.select %183, %181, %188 : vector<16x128xi1>, vector<16x128xf32>
    %c944 = arith.constant 944 : index
    %c0_50 = arith.constant 0 : index
    %190 = vector.load %arg2[%c944, %c0_50] : memref<1248x128xf32, #tpu.memory_space<vmem>>, vector<128x128xf32>
    %cst_51 = arith.constant dense<0.000000e+00> : vector<16x128xf32>
    %191 = tpu.matmul %189, %190, %cst_51 {dimension_numbers = #tpu.dot_dimension_numbers<[1], [0], [0], [1], [0, 0, 1, 1], [], []>} : vector<16x128xf32>, vector<128x128xf32>, vector<16x128xf32> -> vector<16x128xf32>
    %c1072 = arith.constant 1072 : index
    %c0_52 = arith.constant 0 : index
    %192 = vector.load %arg2[%c1072, %c0_52] : memref<1248x128xf32, #tpu.memory_space<vmem>>, vector<128x128xf32>
    %cst_53 = arith.constant dense<0.000000e+00> : vector<16x128xf32>
    %193 = tpu.matmul %84, %192, %cst_53 {dimension_numbers = #tpu.dot_dimension_numbers<[1], [0], [0], [1], [0, 0, 1, 1], [], []>} : vector<16x128xf32>, vector<128x128xf32>, vector<16x128xf32> -> vector<16x128xf32>
    %194 = arith.addf %191, %193 : vector<16x128xf32>
    %c1200 = arith.constant 1200 : index
    %c0_54 = arith.constant 0 : index
    %195 = vector.load %arg2[%c1200, %c0_54] : memref<1248x128xf32, #tpu.memory_space<vmem>>, vector<32x128xf32>
    %cst_55 = arith.constant dense<0.000000e+00> : vector<32x16xf32>
    %196 = tpu.matmul %195, %194, %cst_55 {dimension_numbers = #tpu.dot_dimension_numbers<[1], [1], [0], [0], [0, 0, 1, 0], [], []>} : vector<32x128xf32>, vector<16x128xf32>, vector<32x16xf32> -> vector<32x16xf32>
    %197 = vector.extract_strided_slice %196 {offsets = [0, 0], sizes = [16, 16], strides = [1, 1]} : vector<32x16xf32> to vector<16x16xf32>
    %198 = vector.extract_strided_slice %196 {offsets = [16, 0], sizes = [16, 16], strides = [1, 1]} : vector<32x16xf32> to vector<16x16xf32>
    %199 = vector.extract_strided_slice %3 {offsets = [0, 0], sizes = [16, 16], strides = [1, 1]} : vector<64x16xf32> to vector<16x16xf32>
    %200 = arith.mulf %198, %199 : vector<16x16xf32>
    %cst_56 = arith.constant dense<0.000000e+00> : vector<16xf32>
    %201 = vector.multi_reduction <add>, %200, %cst_56 [1] : vector<16x16xf32> to vector<16xf32>
    %202 = vector.shape_cast %201 : vector<16xf32> to vector<16x1xf32>
    %203 = vector.broadcast %202 : vector<16x1xf32> to vector<16x16xf32>
    %204 = arith.addf %203, %197 : vector<16x16xf32>
    %cst_57 = arith.constant 2.000000e-01 : f32
    %205 = vector.broadcast %cst_57 : f32 to vector<16x16xf32>
    %206 = arith.mulf %205, %204 : vector<16x16xf32>
    %207 = arith.maximumf %204, %206 : vector<16x16xf32>
    %208 = vector.extract_strided_slice %1 {offsets = [0, 0], sizes = [16, 16], strides = [1, 1]} : vector<64x16xf32> to vector<16x16xf32>
    %209 = arith.addf %207, %208 : vector<16x16xf32>
    %cst_58 = arith.constant dense<0xFF800000> : vector<16xf32>
    %210 = vector.multi_reduction <maximumf>, %209, %cst_58 [1] : vector<16x16xf32> to vector<16xf32>
    %211 = vector.shape_cast %210 : vector<16xf32> to vector<16x1xf32>
    %212 = vector.broadcast %211 : vector<16x1xf32> to vector<16x16xf32>
    %213 = arith.subf %209, %212 : vector<16x16xf32>
    %214 = math.exp %213 : vector<16x16xf32>
    %cst_59 = arith.constant dense<0.000000e+00> : vector<16xf32>
    %215 = vector.multi_reduction <add>, %214, %cst_59 [1] : vector<16x16xf32> to vector<16xf32>
    %216 = vector.shape_cast %215 : vector<16xf32> to vector<16x1xf32>
    %217 = tpu.reciprocal %216 {approx = true} : vector<16x1xf32> -> vector<16x1xf32>
    %218 = vector.broadcast %217 : vector<16x1xf32> to vector<16x16xf32>
    %219 = arith.mulf %214, %218 : vector<16x16xf32>
    %cst_60 = arith.constant dense<0.000000e+00> : vector<16x128xf32>
    %220 = tpu.matmul %219, %194, %cst_60 {dimension_numbers = #tpu.dot_dimension_numbers<[1], [0], [0], [1], [0, 0, 1, 1], [], []>} : vector<16x16xf32>, vector<16x128xf32>, vector<16x128xf32> -> vector<16x128xf32>
    %c1232 = arith.constant 1232 : index
    %c0_61 = arith.constant 0 : index
    %221 = vector.load %arg2[%c1232, %c0_61] : memref<1248x128xf32, #tpu.memory_space<vmem>>, vector<16x128xf32>
    %222 = arith.addf %220, %221 : vector<16x128xf32>
    %223 = vector.extract_strided_slice %222 {offsets = [0, 0], sizes = [16, 4], strides = [1, 1]} : vector<16x128xf32> to vector<16x4xf32>
    %c0_62 = arith.constant 0 : index
    %c0_63 = arith.constant 0 : index
    %224 = vector.load %arg3[%c0_62, %c0_63] : memref<16x4xf32, #tpu.memory_space<vmem>>, vector<16x4xf32>
    tpu.vector_store %arg3[%c0_62, %c0_63], %223 {strides = array<i32>} : memref<16x4xf32, #tpu.memory_space<vmem>>, vector<16x4xf32>,
    return
  }
}

</mosaic_0001>

<bundles_post_ra>
// kernel: gat_autoencoder_forward.1
= control target key start
LH: loop header
LB: loop body
LE: loop exit
PB: predicated region body
PF: predicated region fallthrough
CT: control target
= control target key end

     0   :  { %8 = vsyncpa [#allocation3], 0  ;;  %s3243_s12 = smov [#allocation2]   ;;  %s3644_s0 = inlined_call_operand.vmem [shape: f32[16,128], index: 0, kind: input, shape index: {}]   ;;  %s3645_s1 = inlined_call_operand.vmem [shape: f32[2,64,16], index: 1, kind: input, shape index: {}]   ;;  %s3646_s2 = inlined_call_operand.hbm [shape: f32[1248,128], index: 2, kind: input, shape index: {}]   ;;  %s3647_s3 = inlined_call_operand.vmem [shape: f32[16,4], index: 3, kind: output, shape index: {}]  }
   0x1   :  { %s18_s13 = sshll.u32 %s3243_s12, 4  ;;  %s3219_s16 = scalar_lea.hbm %s3646_s2, 19968  ;;  %s19_s13 = int_to_ptr.vmem [resolvable:$true] %s18_s13 }
   0x2   :  { %p3220_p0 = scmp.ne.s32.totalorder %s3646_s2, %s3219_s16  ;;  %p3223_p1 = scmp.lt.u32.totalorder %s3219_s16, %s3646_s2 }
   0x4   :  { %p3225_p2 = pnand %p3223_p1, %p3220_p0 }
   0x6   :  { %3228 = shalt.err (!%p3225_p2)
}
   0x7   :  { %s3229_s21 = scalar_lea.vmem %s19_s13, 19968  ;;  %p3234_p4 = scmp.lt.s32.totalorder %s19_s13, %s19_s13 }
   0x8   :  { %p3230_p3 = scmp.ne.s32.totalorder %s19_s13, %s3229_s21  ;;  %p3235_p5 = scmp.lt.s32.totalorder %s3229_s21, %s3229_s21 }
   0xa   :  { %p3236_p6 = por %p3235_p5, %p3234_p4 }
   0xc   :  { %p3237_p7 = pnand %p3236_p6, %p3230_p3 }
   0xe   :  { %3240 = shalt.err (!%p3237_p7)
}
   0xf   :  { %s3244_s22 = smov 128   ;;  %s3245_s23 = smov 8  }
  0x10   :  { %24 = dma.hbm_to_vmem [thread:$0]  %s3646_s2, 19968, %s19_s13, [#allocation3], %s3244_s22, %s3244_s22, %s3245_s23  }
  0x11   :  { %3241 = dma.done.wait [#allocation3], 19968  }
  0x12   :  { %3242 = vsyncadd [#allocation3], 4294947328  ;;  %v69_v0 = vld [vmem:[#allocation2] sm:$0xff]  ;;  %v70_v1 = vld [vmem:[#allocation2 + $0x8] sm:$0xff]  ;;  %vm329_vm0 = vcmask 130048  }
  0x13   :  { %v71_v2 = vld [vmem:[#allocation2 + $0x10] sm:$0xff]  ;;  %v2855_v3 = vpack.c.bf16 %v70_v1, %v69_v0  ;;  %v72_v4 = vld [vmem:[#allocation2 + $0x18] sm:$0xff]  ;;  %v73_v6 = vld [vmem:[#allocation2 + $0x20] sm:$0xff] }
  0x14   :  { %v2859_v5 = vpack.c.bf16 %v72_v4, %v71_v2  ;;  %v74_v7 = vld [vmem:[#allocation2 + $0x28] sm:$0xff]  ;;  %v67_v9 = vld [vmem:[%s3644_s0] sm:$0xff]  ;;  %v75_v10 = vld [vmem:[#allocation2 + $0x30] sm:$0xff] }
  0x15   :  { %2856 = vmatprep.subr.bf16.mxu0 %v2855_v3  ;;  %v2863_v8 = vpack.c.bf16 %v74_v7, %v73_v6  ;;  %v76_v11 = vld [vmem:[#allocation2 + $0x38] sm:$0xff]  ;;  %2528 = vmatprep.mubr.f32.mxu0 %v67_v9  ;;  %v77_v13 = vld [vmem:[#allocation2 + $0x40] sm:$0xff]  ;;  %v78_v14 = vld [vmem:[#allocation2 + $0x48] sm:$0xff] }
  0x16   :  { %2858 = vmatpush3.bf16.msra.mxu0 %v2855_v3  ;;  %v2867_v12 = vpack.c.bf16 %v76_v11, %v75_v10  ;;  %v2871_v15 = vpack.c.bf16 %v78_v14, %v77_v13  ;;  %v79_v16 = vld [vmem:[#allocation2 + $0x50] sm:$0xff]  ;;  %v80_v17 = vld [vmem:[#allocation2 + $0x58] sm:$0xff]  ;;  %v81_v19 = vld [vmem:[#allocation2 + $0x60] sm:$0xff] }
  0x17   :  { %2860 = vmatprep.subr.bf16.mxu0 %v2859_v5  ;;  %v2875_v18 = vpack.c.bf16 %v80_v17, %v79_v16  ;;  %v82_v20 = vld [vmem:[#allocation2 + $0x68] sm:$0xff]  ;;  %v83_v22 = vld [vmem:[#allocation2 + $0x70] sm:$0xff]  ;;  %v84_v23 = vld [vmem:[#allocation2 + $0x78] sm:$0xff] }
  0x18   :  { %v2879_v21 = vpack.c.bf16 %v82_v20, %v81_v19  ;;  %v2883_v24 = vpack.c.bf16 %v84_v23, %v83_v22  ;;  %v68_v25 = vld [vmem:[%s3644_s0 + $0x8] sm:$0xff]  ;;  %v160_v26 = vld [vmem:[#allocation2 + $0x80] sm:$0xff]  ;;  %v162_v31 = vld [vmem:[#allocation2 + $0x90] sm:$0xff] }
  0x19   :  { %2535 = vmatprep.mubr.f32.mxu1 %v160_v26  ;;  %v161_v30 = vld [vmem:[#allocation2 + $0x88] sm:$0xff]  ;;  %v163_v32 = vld [vmem:[#allocation2 + $0x98] sm:$0xff]  ;;  %v164_v33 = vld [vmem:[#allocation2 + $0xa0] sm:$0xff] }
  0x1a   :  { %2862 = vmatpush3.bf16.msra.mxu0 %v2859_v5  ;;  %v165_v34 = vld [vmem:[#allocation2 + $0xa8] sm:$0xff]  ;;  %v166_v35 = vld [vmem:[#allocation2 + $0xb0] sm:$0xff]  ;;  %v167_v36 = vld [vmem:[#allocation2 + $0xb8] sm:$0xff] }
  0x1b   :  { %2864 = vmatprep.subr.bf16.mxu0 %v2863_v8  ;;  %v168_v37 = vld [vmem:[#allocation2 + $0xc0] sm:$0xff]  ;;  %v169_v38 = vld [vmem:[#allocation2 + $0xc8] sm:$0xff]  ;;  %v170_v39 = vld [vmem:[#allocation2 + $0xd0] sm:$0xff] }
  0x1c   :  { %v171_v40 = vld [vmem:[#allocation2 + $0xd8] sm:$0xff]  ;;  %v172_v41 = vld [vmem:[#allocation2 + $0xe0] sm:$0xff]  ;;  %v173_v42 = vld [vmem:[#allocation2 + $0xe8] sm:$0xff] }
  0x1d   :  { %v174_v43 = vld [vmem:[#allocation2 + $0xf0] sm:$0xff]  ;;  %v175_v44 = vld [vmem:[#allocation2 + $0xf8] sm:$0xff]  ;;  %v3298_v53 = vld [vmem:[%s3645_s1 + $0x40] sm:$0xff] }
  0x1e   :  { %2866 = vmatpush3.bf16.msra.mxu0 %v2863_v8  ;;  %v3303_v55 = vld [vmem:[%s3645_s1 + $0x48] sm:$0xff]  ;;  %v3309_v58 = vld [vmem:[%s3645_s1 + $0x50] sm:$0xff]  ;;  %v3316_v62 = vld [vmem:[%s3645_s1 + $0x58] sm:$0xff] }
  0x1f   :  { %2868 = vmatprep.subr.bf16.mxu0 %v2867_v12  ;;  %v3322_v1 = vld [vmem:[%s3645_s1 + $0x60] sm:$0xff]  ;;  %v3330_v6 = vld [vmem:[%s3645_s1 + $0x68] sm:$0xff]  ;;  %v3336_v9 = vld [vmem:[%s3645_s1 + $0x70] sm:$0xff] }
  0x20   :  { %v3344_v14 = vld [vmem:[%s3645_s1 + $0x78] sm:$0xff]  ;;  %v3354_v26 = vld [vmem:[%s3645_s1] sm:$0xff] }
  0x22   :  { %2870 = vmatpush3.bf16.msra.mxu0 %v2867_v12 }
  0x23   :  { %2872 = vmatprep.subr.bf16.mxu0 %v2871_v15 }
  0x26   :  { %2874 = vmatpush3.bf16.msra.mxu0 %v2871_v15 }
  0x27   :  { %2876 = vmatprep.subr.bf16.mxu0 %v2875_v18 }
  0x2a   :  { %2878 = vmatpush3.bf16.msra.mxu0 %v2875_v18 }
  0x2b   :  { %2880 = vmatprep.subr.bf16.mxu0 %v2879_v21 }
  0x2e   :  { %2882 = vmatpush3.bf16.msra.mxu0 %v2879_v21 }
  0x2f   :  { %2884 = vmatprep.subr.bf16.mxu0 %v2883_v24 }
  0x32   :  { %2886 = vmatpush3.bf16.msra.mxu0 %v2883_v24 }
  0x35   :  { %2529 = vmatmul.mubr.f32.vlgmr.msra.gmra.mrb[0].mxu0 %v68_v25 }
 0x108   :  { %v2530_v27 = vpop.f32.mrb[0].mxu0 }
 0x109   :  { %v151_v28 = vpop.f32.mrb[1].mxu0 }
 0x10a   :  { %v2887_v29 = vpack.c.bf16 %v2530_v27, %v151_v28 }
 0x10c   :  { %2888 = vmatprep.subr.bf16.mxu1 %v2887_v29  ;;  %2892 = vmatprep.subr.bf16.mxu0 %v2887_v29 }
 0x10d   :  { %2890 = vmatpush3.bf16.xpose.msra.mxu1 %v2887_v29  ;;  %2894 = vmatpush3.bf16.msra.mxu0 %v2887_v29 }
 0x114   :  { %2536 = vmatmul.mubr.f32.vlgmr.msra.gmra.mrb[0].mxu1 %v161_v30 }
 0x115   :  { %2538 = vmatprep.mubr.f32.mxu1 %v162_v31 }
 0x118   :  { %2539 = vmatmul.mubr.f32.gmra.mrb[2].mxu1 %v163_v32 }
 0x119   :  { %2541 = vmatprep.mubr.f32.mxu1 %v164_v33 }
 0x11c   :  { %2542 = vmatmul.mubr.f32.gmra.mrb[4].mxu1 %v165_v34 }
 0x11d   :  { %2544 = vmatprep.mubr.f32.mxu1 %v166_v35  ;;  %v3360_v35 = vld [vmem:[%s3645_s1 + $0x8] sm:$0xff] }
 0x120   :  { %2545 = vmatmul.mubr.f32.gmra.mrb[6].mxu1 %v167_v36  ;;  %v3365_v36 = vld [vmem:[%s3645_s1 + $0x10] sm:$0xff] }
 0x121   :  { %2547 = vmatprep.mubr.f32.mxu1 %v168_v37 }
 0x124   :  { %2548 = vmatmul.mubr.f32.gmra.mrb[8].mxu1 %v169_v38 }
 0x125   :  { %2550 = vmatprep.mubr.f32.mxu1 %v170_v39 }
 0x128   :  { %2551 = vmatmul.mubr.f32.gmra.mrb[10].mxu1 %v171_v40 }
 0x129   :  { %2553 = vmatprep.mubr.f32.mxu1 %v172_v41 }
 0x12c   :  { %2554 = vmatmul.mubr.f32.gmra.mrb[12].mxu1 %v173_v42 }
 0x12d   :  { %2556 = vmatprep.mubr.f32.mxu1 %v174_v43 }
 0x130   :  { %2557 = vmatmul.mubr.f32.gmra.mrb[14].mxu1 %v175_v44 }
 0x1e7   :  { %v2537_v45 = vpop.f32.mrb[0].mxu1 }
 0x1e8   :  { %v242_v46 = vpop.f32.mrb[1].mxu1 }
 0x1eb   :  { %v3285_v47 = vpop.f32.mrb[2].mxu1 }
 0x1ec   :  { %v252_v48 = vpop.f32.mrb[3].mxu1 }
 0x1ef   :  { %v3287_v49 = vpop.f32.mrb[4].mxu1 }
 0x1f0   :  { %v3289_v50 = vpop.f32.mrb[5].mxu1 }
 0x1f3   :  { %v3291_v51 = vpop.f32.mrb[6].mxu1 }
 0x1f4   :  { %v3293_v52 = vpop.f32.mrb[7].mxu1 }
 0x1f7   :  { %v2549_v54 = vpop.f32.mrb[8].mxu1 }
 0x1f8   :  { %v282_v56 = vpop.f32.mrb[9].mxu1  ;;  %v322_v59 = vmul.f32 %v2549_v54, %v3303_v55  ;;  %v3375_v54 = vld [vmem:[%s3645_s1 + $0x18] sm:$0xff] }
 0x1f9   :  { %v321_v57 = vmul.f32 %v3298_v53, %v282_v56 }
 0x1fa   :  { %v333_v5 = vsel %vm329_vm0, %v322_v59, 0.0 }
 0x1fb   :  { %v2552_v60 = vpop.f32.mrb[10].mxu1  ;;  %v330_v61 = vsel %vm329_vm0, %v321_v57, 0.0 }
 0x1fc   :  { %v292_v63 = vpop.f32.mrb[11].mxu1  ;;  %331 = vadd.xlane.f32.xlu0 %v330_v61  ;;  %v324_v2 = vmul.f32 %v2552_v60, %v3316_v62 }
 0x1fd   :  { %v323_v0 = vmul.f32 %v3309_v58, %v292_v63 }
 0x1fe   :  { %v339_v12 = vsel %vm329_vm0, %v324_v2, 0.0 }
 0x1ff   :  { %v2555_v3 = vpop.f32.mrb[12].mxu1  ;;  %v336_v4 = vsel %vm329_vm0, %v323_v0, 0.0 }
 0x200   :  { %v302_v7 = vpop.f32.mrb[13].mxu1  ;;  %337 = vadd.xlane.f32.xlu1 %v336_v4  ;;  %334 = vadd.xlane.f32.xlu0 %v333_v5  ;;  %v326_v10 = vmul.f32 %v2555_v3, %v3330_v6  ;;  %v3391_v5 = vld [vmem:[%s3645_s1 + $0x28] sm:$0xff] }
 0x201   :  { %v325_v8 = vmul.f32 %v3322_v1, %v302_v7 }
 0x202   :  { %v345_v18 = vsel %vm329_vm0, %v326_v10, 0.0 }
 0x203   :  { %v2558_v11 = vpop.f32.mrb[14].mxu1  ;;  %v342_v13 = vsel %vm329_vm0, %v325_v8, 0.0 }
 0x204   :  { %v312_v15 = vpop.f32.mrb[15].mxu1  ;;  %340 = vadd.xlane.f32.xlu1 %v339_v12  ;;  %343 = vadd.xlane.f32.xlu0 %v342_v13  ;;  %v328_v17 = vmul.f32 %v2558_v11, %v3344_v14 }
 0x205   :  { %v327_v16 = vmul.f32 %v3336_v9, %v312_v15 }
 0x206   :  { %v351_v20 = vsel %vm329_vm0, %v328_v17, 0.0 }
 0x207   :  { %v348_v19 = vsel %vm329_vm0, %v327_v16, 0.0  ;;  %v3406_v16 = vld [vmem:[%s3645_s1 + $0x38] sm:$0xff] }
 0x208   :  { %346 = vadd.xlane.f32.xlu1 %v345_v18  ;;  %349 = vadd.xlane.f32.xlu0 %v348_v19 }
 0x20c   :  { %352 = vadd.xlane.f32.xlu1 %v351_v20 }
 0x289   :  { %v332_v21 = vpop.xlane.xlu0 %331 }
 0x28a   :  { %v354_v22 = vadd.f32 %v332_v21, %v242_v46 }
 0x28c   :  { %v362_v23 = vmul.f32 0.2, %v354_v22 }
 0x28d   :  { %v338_v24 = vpop.xlane.xlu1 %337  ;;  %v335_v25 = vpop.xlane.xlu0 %334 }
 0x28e   :  { %v370_v27 = vmax.f32 %v354_v22, %v362_v23  ;;  %v356_v28 = vadd.f32 %v338_v24, %v252_v48  ;;  %v355_v29 = vadd.f32 %v2537_v45, %v335_v25 }
 0x290   :  { %v364_v30 = vmul.f32 0.2, %v356_v28  ;;  %v363_v31 = vmul.f32 0.2, %v355_v29  ;;  %v378_v32 = vadd.f32 %v370_v27, %v3354_v26 }
 0x291   :  { %v341_v33 = vpop.xlane.xlu1 %340  ;;  %v344_v34 = vpop.xlane.xlu0 %343 }
 0x292   :  { %v372_v37 = vmax.f32 %v356_v28, %v364_v30  ;;  %v371_v38 = vmax.f32 %v355_v29, %v363_v31  ;;  %v357_v39 = vadd.f32 %v3285_v47, %v341_v33  ;;  %v358_v40 = vadd.f32 %v344_v34, %v3289_v50  ;;  %v3380_v47 = vld [vmem:[%s3645_s1 + $0x20] sm:$0xff] }
 0x293   :  { %v386_v41 = vsel %vm329_vm0, %v378_v32, -inf }
 0x294   :  { %v365_v42 = vmul.f32 0.2, %v357_v39  ;;  %v366_v43 = vmul.f32 0.2, %v358_v40  ;;  %387 = vmax.xlane.f32.xlu0 %v386_v41  ;;  %v379_v44 = vadd.f32 %v371_v38, %v3360_v35  ;;  %v380_v45 = vadd.f32 %v372_v37, %v3365_v36 }
 0x295   :  { %v347_v46 = vpop.xlane.xlu1 %346  ;;  %v350_v48 = vpop.xlane.xlu0 %349 }
 0x296   :  { %v373_v50 = vmax.f32 %v357_v39, %v365_v42  ;;  %v374_v56 = vmax.f32 %v358_v40, %v366_v43  ;;  %v359_v57 = vadd.f32 %v3287_v49, %v347_v46  ;;  %v360_v59 = vadd.f32 %v350_v48, %v3293_v52  ;;  %v3396_v49 = vld [vmem:[%s3645_s1 + $0x30] sm:$0xff] }
 0x297   :  { %v389_v60 = vsel %vm329_vm0, %v379_v44, -inf  ;;  %v392_v61 = vsel %vm329_vm0, %v380_v45, -inf }
 0x298   :  { %v367_v63 = vmul.f32 0.2, %v359_v57  ;;  %v368_v0 = vmul.f32 0.2, %v360_v59  ;;  %390 = vmax.xlane.f32.xlu1 %v389_v60  ;;  %393 = vmax.xlane.f32.xlu0 %v392_v61  ;;  %v381_v2 = vadd.f32 %v373_v50, %v3375_v54  ;;  %v382_v3 = vadd.f32 %v374_v56, %v3380_v47 }
 0x299   :  { %v353_v4 = vpop.xlane.xlu1 %352 }
 0x29a   :  { %v375_v52 = vmax.f32 %v359_v57, %v367_v63  ;;  %v376_v7 = vmax.f32 %v360_v59, %v368_v0  ;;  %v361_v8 = vadd.f32 %v3291_v51, %v353_v4  ;;  %v395_v10 = vsel %vm329_vm0, %v381_v2, -inf }
 0x29b   :  { %v398_v11 = vsel %vm329_vm0, %v382_v3, -inf }
 0x29c   :  { %v369_v12 = vmul.f32 0.2, %v361_v8  ;;  %396 = vmax.xlane.f32.xlu1 %v395_v10  ;;  %399 = vmax.xlane.f32.xlu0 %v398_v11  ;;  %v383_v13 = vadd.f32 %v375_v52, %v3391_v5  ;;  %v384_v15 = vadd.f32 %v376_v7, %v3396_v49 }
 0x29e   :  { %v377_v17 = vmax.f32 %v361_v8, %v369_v12  ;;  %v401_v18 = vsel %vm329_vm0, %v383_v13, -inf  ;;  %v404_v51 = vsel %vm329_vm0, %v384_v15, -inf }
 0x2a0   :  { %402 = vmax.xlane.f32.xlu1 %v401_v18  ;;  %405 = vmax.xlane.f32.xlu0 %v404_v51  ;;  %v385_v19 = vadd.f32 %v377_v17, %v3406_v16 }
 0x2a2   :  { %v407_v20 = vsel %vm329_vm0, %v385_v19, -inf }
 0x2a4   :  { %408 = vmax.xlane.f32.xlu1 %v407_v20 }
 0x321   :  { %v388_v21 = vpop.xlane.xlu0 %387 }
 0x322   :  { %v410_v22 = vsub.f32 %v378_v32, %v388_v21 }
 0x324   :  { %v418_v23 = vmul.f32 1.442695, %v410_v22 }
 0x325   :  { %v391_v24 = vpop.xlane.xlu1 %390  ;;  %v394_v25 = vpop.xlane.xlu0 %393 }
 0x326   :  { %3087 = vpow2.f32 %v418_v23  ;;  %v411_v27 = vsub.f32 %v379_v44, %v391_v24  ;;  %v412_v28 = vsub.f32 %v380_v45, %v394_v25 }
 0x328   :  { %v420_v29 = vmul.f32 1.442695, %v411_v27  ;;  %v422_v30 = vmul.f32 1.442695, %v412_v28 }
 0x329   :  { %v397_v31 = vpop.xlane.xlu1 %396  ;;  %v400_v33 = vpop.xlane.xlu0 %399 }
 0x32a   :  { %3089 = vpow2.f32 %v420_v29  ;;  %v413_v34 = vsub.f32 %v381_v2, %v397_v31  ;;  %v414_v37 = vsub.f32 %v382_v3, %v400_v33 }
 0x32b   :  { %3091 = vpow2.f32 %v422_v30 }
 0x32c   :  { %v424_v38 = vmul.f32 1.442695, %v413_v34  ;;  %v426_v39 = vmul.f32 1.442695, %v414_v37 }
 0x32d   :  { %v403_v40 = vpop.xlane.xlu1 %402  ;;  %v406_v41 = vpop.xlane.xlu0 %405 }
 0x32e   :  { %3093 = vpow2.f32 %v424_v38  ;;  %v415_v32 = vsub.f32 %v383_v13, %v403_v40  ;;  %v416_v42 = vsub.f32 %v384_v15, %v406_v41  ;;  %v633_v41 = vld [vmem:[#allocation2 + $0x110] sm:$0xff] }
 0x32f   :  { %3095 = vpow2.f32 %v426_v39 }
 0x330   :  { %v3088_v43 = vpop.eup %3087  ;;  %v428_v46 = vmul.f32 1.442695, %v415_v32  ;;  %v430_v44 = vmul.f32 1.442695, %v416_v42  ;;  %v634_v32 = vld [vmem:[#allocation2 + $0x118] sm:$0xff] }
 0x331   :  { %v409_v45 = vpop.xlane.xlu1 %408  ;;  %v434_v48 = vsel %vm329_vm0, %v3088_v43, 0.0  ;;  %v2895_v42 = vpack.c.bf16 %v634_v32, %v633_v41 }
 0x332   :  { %3097 = vpow2.f32 %v428_v46  ;;  %v417_v50 = vsub.f32 %v385_v19, %v409_v45  ;;  %435 = vadd.xlane.f32.xlu0 %v434_v48  ;;  %v636_v46 = vld [vmem:[#allocation2 + $0x128] sm:$0xff]  ;;  %v637_v45 = vld [vmem:[#allocation2 + $0x130] sm:$0xff]  ;;  %v638_v48 = vld [vmem:[#allocation2 + $0x138] sm:$0xff] }
 0x333   :  { %3099 = vpow2.f32 %v430_v44  ;;  %2896 = vmatprep.subr.bf16.mxu1 %v2895_v42 }
 0x334   :  { %v3090_v56 = vpop.eup %3089  ;;  %v432_v57 = vmul.f32 1.442695, %v417_v50  ;;  %2898 = vmatpush3.bf16.msra.mxu1 %v2895_v42  ;;  %v2903_v50 = vpack.c.bf16 %v638_v48, %v637_v45  ;;  %v618_v42 = vld [vmem:[#allocation2 + $0x108] sm:$0xff] }
 0x335   :  { %v3092_v59 = vpop.eup %3091  ;;  %v437_v60 = vsel %vm329_vm0, %v3090_v56, 0.0 }
 0x336   :  { %3101 = vpow2.f32 %v432_v57  ;;  %438 = vadd.xlane.f32.xlu1 %v437_v60  ;;  %v440_v61 = vsel %vm329_vm0, %v3092_v59, 0.0  ;;  %v640_v57 = vld [vmem:[#allocation2 + $0x148] sm:$0xff]  ;;  %v641_v60 = vld [vmem:[#allocation2 + $0x150] sm:$0xff] }
 0x337   :  { %441 = vadd.xlane.f32.xlu0 %v440_v61  ;;  %v642_v61 = vld [vmem:[#allocation2 + $0x158] sm:$0xff] }
 0x338   :  { %v3094_v63 = vpop.eup %3093 }
 0x339   :  { %v3096_v0 = vpop.eup %3095  ;;  %v443_v2 = vsel %vm329_vm0, %v3094_v63, 0.0 }
 0x33a   :  { %444 = vadd.xlane.f32.xlu1 %v443_v2  ;;  %v446_v3 = vsel %vm329_vm0, %v3096_v0, 0.0  ;;  %v644_v2 = vld [vmem:[#allocation2 + $0x168] sm:$0xff] }
 0x33b   :  { %447 = vadd.xlane.f32.xlu0 %v446_v3  ;;  %v645_v3 = vld [vmem:[#allocation2 + $0x170] sm:$0xff] }
 0x33c   :  { %v3098_v4 = vpop.eup %3097 }
 0x33d   :  { %v3100_v52 = vpop.eup %3099  ;;  %v449_v7 = vsel %vm329_vm0, %v3098_v4, 0.0 }
 0x33e   :  { %450 = vadd.xlane.f32.xlu1 %v449_v7  ;;  %v452_v8 = vsel %vm329_vm0, %v3100_v52, 0.0 }
 0x33f   :  { %453 = vadd.xlane.f32.xlu0 %v452_v8  ;;  %v647_v8 = vld [vmem:[#allocation2 + $0x180] sm:$0xff] }
 0x340   :  { %v3102_v10 = vpop.eup %3101 }
 0x341   :  { %v455_v11 = vsel %vm329_vm0, %v3102_v10, 0.0 }
 0x342   :  { %456 = vadd.xlane.f32.xlu1 %v455_v11 }
 0x3bf   :  { %v436_v12 = vpop.xlane.xlu0 %435 }
 0x3c0   :  { %3103 = vrcp.f32 %v436_v12  ;;  %v45_v12 = vlaneseq }
 0x3c3   :  { %v439_v13 = vpop.xlane.xlu1 %438 }
 0x3c4   :  { %3105 = vrcp.f32 %v439_v13  ;;  %v442_v15 = vpop.xlane.xlu0 %441  ;;  %v46_v13 = vand.u32 127, %v45_v12  ;;  %v726_v12 = vld [vmem:[#allocation2 + $0x1a0] sm:$0xff] }
 0x3c5   :  { %3107 = vrcp.f32 %v442_v15 }
 0x3c6   :  { %vm52_vm1 = vcmp.ge.s32.totalorder %v46_v13, 8  ;;  %vm53_vm2 = vcmp.lt.s32.totalorder %v46_v13, 16  ;;  %vm48_vm3 = vcmp.lt.s32.totalorder %v46_v13, 8  ;;  %vm57_vm5 = vcmp.ge.s32.totalorder %v46_v13, 16 }
 0x3c7   :  { %v445_v17 = vpop.xlane.xlu1 %444  ;;  %vm54_vm4 = vmand %vm52_vm1, %vm53_vm2  ;;  %vm58_vm6 = vcmp.lt.s32.totalorder %v46_v13, 24  ;;  %vm62_vm8 = vcmp.ge.s32.totalorder %v46_v13, 24  ;;  %vm63_vm9 = vcmp.lt.s32.totalorder %v46_v13, 32  ;;  %v727_v13 = vld [vmem:[#allocation2 + $0x1a8] sm:$0xff]  ;;  %vm2242_vm2 = vcmask 31744  }
 0x3c8   :  { %3109 = vrcp.f32 %v445_v17  ;;  %v448_v18 = vpop.xlane.xlu0 %447  ;;  %vm59_vm7 = vmand %vm57_vm5, %vm58_vm6 }
 0x3c9   :  { %3111 = vrcp.f32 %v448_v18  ;;  %v3246_v18 = vmov 0.0   ;;  %vm64_vm10 = vmand %vm62_vm8, %vm63_vm9 }
 0x3ca   :  { %v3104_v51 = vpop.eup %3103 }
 0x3cb   :  { %v451_v19 = vpop.xlane.xlu1 %450  ;;  %v466_v20 = vmul.f32 %v3104_v51, %v3088_v43  ;;  %v635_v43 = vld [vmem:[#allocation2 + $0x120] sm:$0xff]  ;;  %v3428_v51 = vsel %vm48_vm3, 1.0, %v3246_v18 }
 0x3cc   :  { %3113 = vrcp.f32 %v451_v19  ;;  %v454_v21 = vpop.xlane.xlu0 %453  ;;  %v2899_v44 = vpack.c.bf16 %v636_v46, %v635_v43  ;;  %v3430_v19 = vsel %vm54_vm4, 1.0, %v3246_v18 }
 0x3cd   :  { %3115 = vrcp.f32 %v454_v21  ;;  %2563 = vmatprep.mubr.msk.f32.mxu0 %vm329_vm0, %v466_v20 }
 0x3ce   :  { %v3106_v22 = vpop.eup %3105  ;;  %2900 = vmatprep.subr.bf16.mxu1 %v2899_v44 }
 0x3cf   :  { %v3108_v23 = vpop.eup %3107  ;;  %v467_v24 = vmul.f32 %v3106_v22, %v3090_v56  ;;  %v457_v25 = vpop.xlane.xlu1 %456  ;;  %2902 = vmatpush3.bf16.msra.mxu1 %v2899_v44  ;;  %v639_v56 = vld [vmem:[#allocation2 + $0x140] sm:$0xff] }
 0x3d0   :  { %3117 = vrcp.f32 %v457_v25  ;;  %v468_v27 = vmul.f32 %v3108_v23, %v3092_v59  ;;  %2904 = vmatprep.subr.bf16.mxu1 %v2903_v50  ;;  %v2907_v59 = vpack.c.bf16 %v640_v57, %v639_v56  ;;  %v617_v44 = vld [vmem:[#allocation2 + $0x100] sm:$0xff] }
 0x3d1   :  { %2564 = vmatmul.mubr.msk.f32.vlgmr.msra.gmra.mrb[2].mxu0 %vm329_vm0, %v467_v24 }
 0x3d2   :  { %v3110_v28 = vpop.eup %3109  ;;  %2566 = vmatprep.mubr.msk.f32.mxu0 %vm329_vm0, %v468_v27  ;;  %v3436_v27 = vsel %vm59_vm7, 1.0, %v3246_v18 }
 0x3d3   :  { %v3112_v29 = vpop.eup %3111  ;;  %v469_v30 = vmul.f32 %v3110_v28, %v3094_v63  ;;  %2906 = vmatpush3.bf16.msra.mxu1 %v2903_v50  ;;  %v2911_v63 = vpack.c.bf16 %v642_v61, %v641_v60 }
 0x3d4   :  { %v470_v31 = vmul.f32 %v3112_v29, %v3096_v0  ;;  %2908 = vmatprep.subr.bf16.mxu1 %v2907_v59  ;;  %v643_v0 = vld [vmem:[#allocation2 + $0x160] sm:$0xff] }
 0x3d5   :  { %2567 = vmatmul.mubr.msk.f32.gmra.mrb[4].mxu0 %vm329_vm0, %v469_v30 }
 0x3d6   :  { %v3114_v33 = vpop.eup %3113  ;;  %2569 = vmatprep.mubr.msk.f32.mxu0 %vm329_vm0, %v470_v31 }
 0x3d7   :  { %v3116_v34 = vpop.eup %3115  ;;  %v471_v37 = vmul.f32 %v3114_v33, %v3098_v4  ;;  %2910 = vmatpush3.bf16.msra.mxu1 %v2907_v59  ;;  %v2915_v4 = vpack.c.bf16 %v644_v2, %v643_v0 }
 0x3d8   :  { %v472_v38 = vmul.f32 %v3116_v34, %v3100_v52  ;;  %2912 = vmatprep.subr.bf16.mxu1 %v2911_v63  ;;  %v646_v52 = vld [vmem:[#allocation2 + $0x178] sm:$0xff] }
 0x3d9   :  { %2570 = vmatmul.mubr.msk.f32.gmra.mrb[6].mxu0 %vm329_vm0, %v471_v37  ;;  %v2919_v7 = vpack.c.bf16 %v646_v52, %v645_v3  ;;  %v3440_v37 = vsel %vm64_vm10, 1.0, %v3246_v18  ;;  %v724_v52 = vld [vmem:[#allocation2 + $0x190] sm:$0xff]  ;;  %v730_v18 = vld [vmem:[#allocation2 + $0x1c0] sm:$0xff] }
 0x3da   :  { %v3118_v39 = vpop.eup %3117  ;;  %2572 = vmatprep.mubr.msk.f32.mxu0 %vm329_vm0, %v472_v38 }
 0x3db   :  { %v473_v40 = vmul.f32 %v3118_v39, %v3102_v10  ;;  %2914 = vmatpush3.bf16.msra.mxu1 %v2911_v63  ;;  %v648_v10 = vld [vmem:[#allocation2 + $0x188] sm:$0xff] }
 0x3dc   :  { %2916 = vmatprep.subr.bf16.mxu1 %v2915_v4  ;;  %v2923_v11 = vpack.c.bf16 %v648_v10, %v647_v8 }
 0x3dd   :  { %2573 = vmatmul.mubr.msk.f32.gmra.mrb[8].mxu0 %vm329_vm0, %v473_v40 }
 0x3df   :  { %2918 = vmatpush3.bf16.msra.mxu1 %v2915_v4 }
 0x3e0   :  { %2920 = vmatprep.subr.bf16.mxu1 %v2919_v7 }
 0x3e3   :  { %2922 = vmatpush3.bf16.msra.mxu1 %v2919_v7 }
 0x3e4   :  { %2924 = vmatprep.subr.bf16.mxu1 %v2923_v11 }
 0x3e7   :  { %2926 = vmatpush3.bf16.msra.mxu1 %v2923_v11  ;;  %v725_v11 = vld [vmem:[#allocation2 + $0x198] sm:$0xff] }
 0x4a4   :  { %v2565_v15 = vpop.f32.mrb[2].mxu0 }
 0x4a5   :  { %v564_v17 = vpop.f32.mrb[3].mxu0  ;;  %v604_v21 = vmul.f32 %v2565_v15, %v3428_v51  ;;  %v728_v15 = vld [vmem:[#allocation2 + $0x1b0] sm:$0xff] }
 0x4a6   :  { %v603_v24 = vmul.f32 %v3428_v51, %v564_v17  ;;  %v729_v17 = vld [vmem:[#allocation2 + $0x1b8] sm:$0xff] }
 0x4a8   :  { %v2568_v20 = vpop.f32.mrb[4].mxu0 }
 0x4a9   :  { %v606_v22 = vmul.f32 %v2568_v20, %v3430_v19  ;;  %v574_v23 = vpop.f32.mrb[5].mxu0  ;;  %v731_v20 = vld [vmem:[#allocation2 + $0x1c8] sm:$0xff] }
 0x4aa   :  { %v605_v25 = vmul.f32 %v3430_v19, %v574_v23  ;;  %v734_v23 = vld [vmem:[#allocation2 + $0x1e0] sm:$0xff] }
 0x4ab   :  { %v608_v28 = vadd.f32 %v606_v22, %v604_v21  ;;  %v732_v21 = vld [vmem:[#allocation2 + $0x1d0] sm:$0xff]  ;;  %v733_v22 = vld [vmem:[#allocation2 + $0x1d8] sm:$0xff] }
 0x4ac   :  { %v607_v29 = vadd.f32 %v605_v25, %v603_v24  ;;  %v2571_v30 = vpop.f32.mrb[6].mxu0  ;;  %v735_v24 = vld [vmem:[#allocation2 + $0x1e8] sm:$0xff]  ;;  %v736_v25 = vld [vmem:[#allocation2 + $0x1f0] sm:$0xff] }
 0x4ad   :  { %v610_v31 = vmul.f32 %v2571_v30, %v3436_v27  ;;  %v584_v33 = vpop.f32.mrb[7].mxu0  ;;  %v739_v30 = vld [vmem:[#allocation2 + $0x208] sm:$0xff] }
 0x4ae   :  { %v609_v34 = vmul.f32 %v3436_v27, %v584_v33 }
 0x4af   :  { %v612_v38 = vadd.f32 %v610_v31, %v608_v28  ;;  %v737_v28 = vld [vmem:[#allocation2 + $0x1f8] sm:$0xff] }
 0x4b0   :  { %v611_v39 = vadd.f32 %v609_v34, %v607_v29  ;;  %v2574_v40 = vpop.f32.mrb[8].mxu0  ;;  %v738_v29 = vld [vmem:[#allocation2 + $0x200] sm:$0xff] }
 0x4b1   :  { %v614_v41 = vmul.f32 %v2574_v40, %v3440_v37  ;;  %v594_v32 = vpop.f32.mrb[9].mxu0 }
 0x4b2   :  { %v613_v43 = vmul.f32 %v3440_v37, %v594_v32 }
 0x4b3   :  { %v616_v46 = vadd.f32 %v614_v41, %v612_v38 }
 0x4b4   :  { %v615_v45 = vadd.f32 %v613_v43, %v611_v39 }
 0x4b5   :  { %v620_v48 = vadd.f32 %v618_v42, %v616_v46 }
 0x4b6   :  { %v619_v50 = vadd.f32 %v617_v44, %v615_v45 }
 0x4b7   :  { %v624_v56 = vmin.f32 %v620_v48, 0.0  ;;  %vm622_vm12 = vcmp.gt.f32.partialorder %v620_v48, 0.0 }
 0x4b8   :  { %v623_v57 = vmin.f32 %v619_v50, 0.0  ;;  %vm621_vm11 = vcmp.gt.f32.partialorder %v619_v50, 0.0 }
 0x4b9   :  { %v627_v59 = vmul.f32 1.442695, %v624_v56 }
 0x4ba   :  { %v625_v60 = vmul.f32 1.442695, %v623_v57 }
 0x4bb   :  { %3119 = vpow2.f32 %v627_v59 }
 0x4bc   :  { %3121 = vpow2.f32 %v625_v60 }
 0x4c5   :  { %v3120_v61 = vpop.eup %3119 }
 0x4c6   :  { %v3122_v63 = vpop.eup %3121  ;;  %v2271_v0 = vadd.f32 -1.0, %v3120_v61 }
 0x4c7   :  { %v2270_v2 = vadd.f32 -1.0, %v3122_v63 }
 0x4c8   :  { %v3447_v4 = vsel %vm622_vm12, %v620_v48, %v2271_v0 }
 0x4c9   :  { %v3444_v3 = vsel %vm621_vm11, %v619_v50, %v2270_v2 }
 0x4ca   :  { %2607 = vmatprep.mubr.f32.mxu1 %v3444_v3 }
 0x4cb   :  { %2608 = vmatmul.mubr.f32.vlgmr.msra.gmra.mrb[16].mxu1 %v3447_v4 }
 0x4cc   :  { %2614 = vmatprep.mubr.f32.mxu1 %v724_v52 }
 0x59e   :  { %v2609_v7 = vpop.f32.mrb[16].mxu1 }
 0x59f   :  { %v715_v8 = vpop.f32.mrb[17].mxu1 }
 0x5a0   :  { %v2927_v10 = vpack.c.bf16 %v2609_v7, %v715_v8 }
 0x5a2   :  { %2928 = vmatprep.subr.bf16.mxu1 %v2927_v10  ;;  %2932 = vmatprep.subr.bf16.mxu0 %v2927_v10 }
 0x5a3   :  { %2930 = vmatpush3.bf16.xpose.msra.mxu1 %v2927_v10  ;;  %2934 = vmatpush3.bf16.msra.mxu0 %v2927_v10 }
 0x5aa   :  { %2615 = vmatmul.mubr.f32.vlgmr.msra.gmra.mrb[18].mxu1 %v725_v11 }
 0x5ab   :  { %2617 = vmatprep.mubr.f32.mxu1 %v726_v12 }
 0x5ae   :  { %2618 = vmatmul.mubr.f32.gmra.mrb[20].mxu1 %v727_v13 }
 0x5af   :  { %2620 = vmatprep.mubr.f32.mxu1 %v728_v15 }
 0x5b2   :  { %2621 = vmatmul.mubr.f32.gmra.mrb[22].mxu1 %v729_v17 }
 0x5b3   :  { %2623 = vmatprep.mubr.f32.mxu1 %v730_v18 }
 0x5b6   :  { %2624 = vmatmul.mubr.f32.gmra.mrb[24].mxu1 %v731_v20 }
 0x5b7   :  { %2626 = vmatprep.mubr.f32.mxu1 %v732_v21 }
 0x5ba   :  { %2627 = vmatmul.mubr.f32.gmra.mrb[26].mxu1 %v733_v22 }
 0x5bb   :  { %2629 = vmatprep.mubr.f32.mxu1 %v734_v23 }
 0x5be   :  { %2630 = vmatmul.mubr.f32.gmra.mrb[28].mxu1 %v735_v24 }
 0x5bf   :  { %2632 = vmatprep.mubr.f32.mxu1 %v736_v25 }
 0x5c2   :  { %2633 = vmatmul.mubr.f32.gmra.mrb[30].mxu1 %v737_v28 }
 0x5c3   :  { %2635 = vmatprep.mubr.f32.mxu1 %v738_v29 }
 0x5c6   :  { %2636 = vmatmul.mubr.f32.gmra.mrb[32].mxu1 %v739_v30 }
 0x67d   :  { %v2616_v31 = vpop.f32.mrb[18].mxu1 }
 0x67e   :  { %v806_v33 = vpop.f32.mrb[19].mxu1 }
 0x681   :  { %v2619_v34 = vpop.f32.mrb[20].mxu1 }
 0x682   :  { %v816_v38 = vpop.f32.mrb[21].mxu1 }
 0x685   :  { %v2622_v39 = vpop.f32.mrb[22].mxu1 }
 0x686   :  { %v826_v40 = vpop.f32.mrb[23].mxu1 }
 0x689   :  { %v3450_v41 = vpop.f32.mrb[24].mxu1 }
 0x68a   :  { %v3452_v32 = vpop.f32.mrb[25].mxu1 }
 0x68d   :  { %v2628_v42 = vpop.f32.mrb[26].mxu1 }
 0x68e   :  { %v886_v43 = vmul.f32 %v2628_v42, %v3303_v55  ;;  %v846_v46 = vpop.f32.mrb[27].mxu1 }
 0x68f   :  { %v885_v44 = vmul.f32 %v3298_v53, %v846_v46 }
 0x690   :  { %v896_v45 = vsel %vm329_vm0, %v886_v43, 0.0 }
 0x691   :  { %897 = vadd.xlane.f32.xlu1 %v896_v45  ;;  %v2631_v48 = vpop.f32.mrb[28].mxu1  ;;  %v893_v50 = vsel %vm329_vm0, %v885_v44, 0.0 }
 0x692   :  { %v888_v56 = vmul.f32 %v2631_v48, %v3316_v62  ;;  %894 = vadd.xlane.f32.xlu0 %v893_v50  ;;  %v856_v57 = vpop.f32.mrb[29].mxu1 }
 0x693   :  { %v887_v59 = vmul.f32 %v3309_v58, %v856_v57 }
 0x694   :  { %v902_v60 = vsel %vm329_vm0, %v888_v56, 0.0 }
 0x695   :  { %903 = vadd.xlane.f32.xlu1 %v902_v60  ;;  %v2634_v61 = vpop.f32.mrb[30].mxu1  ;;  %v899_v55 = vsel %vm329_vm0, %v887_v59, 0.0 }
 0x696   :  { %v890_v53 = vmul.f32 %v2634_v61, %v3330_v6  ;;  %900 = vadd.xlane.f32.xlu0 %v899_v55  ;;  %v866_v63 = vpop.f32.mrb[31].mxu1 }
 0x697   :  { %v889_v0 = vmul.f32 %v3322_v1, %v866_v63 }
 0x698   :  { %v908_v2 = vsel %vm329_vm0, %v890_v53, 0.0 }
 0x699   :  { %909 = vadd.xlane.f32.xlu1 %v908_v2  ;;  %v2637_v62 = vpop.f32.mrb[32].mxu1  ;;  %v905_v52 = vsel %vm329_vm0, %v889_v0, 0.0 }
 0x69a   :  { %v892_v58 = vmul.f32 %v2637_v62, %v3344_v14  ;;  %906 = vadd.xlane.f32.xlu0 %v905_v52  ;;  %v876_v7 = vpop.f32.mrb[33].mxu1 }
 0x69b   :  { %v891_v8 = vmul.f32 %v3336_v9, %v876_v7 }
 0x69c   :  { %v914_v10 = vsel %vm329_vm0, %v892_v58, 0.0 }
 0x69d   :  { %915 = vadd.xlane.f32.xlu1 %v914_v10  ;;  %v911_v6 = vsel %vm329_vm0, %v891_v8, 0.0 }
 0x69e   :  { %912 = vadd.xlane.f32.xlu0 %v911_v6 }
 0x71e   :  { %v898_v11 = vpop.xlane.xlu1 %897 }
 0x71f   :  { %v918_v1 = vadd.f32 %v2616_v31, %v898_v11  ;;  %v895_v12 = vpop.xlane.xlu0 %894 }
 0x720   :  { %v917_v13 = vadd.f32 %v895_v12, %v806_v33 }
 0x721   :  { %v926_v15 = vmul.f32 0.2, %v918_v1 }
 0x722   :  { %v925_v17 = vmul.f32 0.2, %v917_v13  ;;  %v904_v18 = vpop.xlane.xlu1 %903 }
 0x723   :  { %v934_v20 = vmax.f32 %v918_v1, %v926_v15  ;;  %v920_v21 = vadd.f32 %v2619_v34, %v904_v18  ;;  %v901_v14 = vpop.xlane.xlu0 %900 }
 0x724   :  { %v933_v22 = vmax.f32 %v917_v13, %v925_v17  ;;  %v919_v23 = vadd.f32 %v901_v14, %v816_v38 }
 0x725   :  { %v928_v24 = vmul.f32 0.2, %v920_v21  ;;  %v942_v9 = vadd.f32 %v934_v20, %v3360_v35 }
 0x726   :  { %v927_v25 = vmul.f32 0.2, %v919_v23  ;;  %v910_v28 = vpop.xlane.xlu1 %909  ;;  %v941_v29 = vadd.f32 %v933_v22, %v3354_v26 }
 0x727   :  { %v936_v30 = vmax.f32 %v920_v21, %v928_v24  ;;  %v922_v42 = vadd.f32 %v2622_v39, %v910_v28  ;;  %v907_v31 = vpop.xlane.xlu0 %906  ;;  %v952_v33 = vsel %vm329_vm0, %v942_v9, -inf }
 0x728   :  { %v935_v43 = vmax.f32 %v919_v23, %v927_v25  ;;  %v921_v46 = vadd.f32 %v907_v31, %v826_v40  ;;  %953 = vmax.xlane.f32.xlu1 %v952_v33  ;;  %v949_v34 = vsel %vm329_vm0, %v941_v29, -inf }
 0x729   :  { %v930_v44 = vmul.f32 0.2, %v922_v42  ;;  %950 = vmax.xlane.f32.xlu0 %v949_v34  ;;  %v944_v38 = vadd.f32 %v936_v30, %v3375_v54 }
 0x72a   :  { %v929_v45 = vmul.f32 0.2, %v921_v46  ;;  %v916_v35 = vpop.xlane.xlu1 %915  ;;  %v943_v48 = vadd.f32 %v935_v43, %v3365_v36 }
 0x72b   :  { %v938_v50 = vmax.f32 %v922_v42, %v930_v44  ;;  %v924_v26 = vadd.f32 %v3450_v41, %v916_v35  ;;  %v913_v39 = vpop.xlane.xlu0 %912  ;;  %v958_v56 = vsel %vm329_vm0, %v944_v38, -inf }
 0x72c   :  { %v937_v57 = vmax.f32 %v921_v46, %v929_v45  ;;  %v923_v40 = vadd.f32 %v913_v39, %v3452_v32  ;;  %959 = vmax.xlane.f32.xlu1 %v958_v56  ;;  %v955_v59 = vsel %vm329_vm0, %v943_v48, -inf }
 0x72d   :  { %v932_v60 = vmul.f32 0.2, %v924_v26  ;;  %956 = vmax.xlane.f32.xlu0 %v955_v59  ;;  %v946_v54 = vadd.f32 %v938_v50, %v3391_v5 }
 0x72e   :  { %v931_v61 = vmul.f32 0.2, %v923_v40  ;;  %v945_v55 = vadd.f32 %v937_v57, %v3380_v47 }
 0x72f   :  { %v940_v36 = vmax.f32 %v924_v26, %v932_v60  ;;  %v964_v53 = vsel %vm329_vm0, %v946_v54, -inf }
 0x730   :  { %v939_v41 = vmax.f32 %v923_v40, %v931_v61  ;;  %965 = vmax.xlane.f32.xlu1 %v964_v53  ;;  %v961_v63 = vsel %vm329_vm0, %v945_v55, -inf }
 0x731   :  { %962 = vmax.xlane.f32.xlu0 %v961_v63  ;;  %v948_v32 = vadd.f32 %v940_v36, %v3406_v16 }
 0x732   :  { %v947_v0 = vadd.f32 %v939_v41, %v3396_v49 }
 0x733   :  { %v970_v2 = vsel %vm329_vm0, %v948_v32, -inf }
 0x734   :  { %971 = vmax.xlane.f32.xlu1 %v970_v2  ;;  %v967_v5 = vsel %vm329_vm0, %v947_v0, -inf }
 0x735   :  { %968 = vmax.xlane.f32.xlu0 %v967_v5 }
 0x7b5   :  { %v954_v62 = vpop.xlane.xlu1 %953 }
 0x7b6   :  { %v974_v47 = vsub.f32 %v942_v9, %v954_v62  ;;  %v951_v52 = vpop.xlane.xlu0 %950 }
 0x7b7   :  { %v973_v58 = vsub.f32 %v941_v29, %v951_v52 }
 0x7b8   :  { %v983_v7 = vmul.f32 1.442695, %v974_v47 }
 0x7b9   :  { %v981_v8 = vmul.f32 1.442695, %v973_v58  ;;  %v960_v10 = vpop.xlane.xlu1 %959 }
 0x7ba   :  { %3123 = vpow2.f32 %v983_v7  ;;  %v976_v6 = vsub.f32 %v944_v38, %v960_v10  ;;  %v957_v11 = vpop.xlane.xlu0 %956  ;;  %v1212_v10 = vld [vmem:[#allocation2 + $0x2a0] sm:$0xff] }
 0x7bb   :  { %3125 = vpow2.f32 %v981_v8  ;;  %v975_v16 = vsub.f32 %v943_v48, %v957_v11 }
 0x7bc   :  { %v987_v1 = vmul.f32 1.442695, %v976_v6  ;;  %v1213_v6 = vld [vmem:[#allocation2 + $0x2a8] sm:$0xff] }
 0x7bd   :  { %v985_v49 = vmul.f32 1.442695, %v975_v16  ;;  %v966_v12 = vpop.xlane.xlu1 %965  ;;  %v2935_v11 = vpack.c.bf16 %v1213_v6, %v1212_v10  ;;  %v1214_v16 = vld [vmem:[#allocation2 + $0x2b0] sm:$0xff] }
 0x7be   :  { %3127 = vpow2.f32 %v987_v1  ;;  %v978_v13 = vsub.f32 %v946_v54, %v966_v12  ;;  %v963_v15 = vpop.xlane.xlu0 %962  ;;  %v1215_v1 = vld [vmem:[#allocation2 + $0x2b8] sm:$0xff]  ;;  %v1216_v12 = vld [vmem:[#allocation2 + $0x2c0] sm:$0xff] }
 0x7bf   :  { %3129 = vpow2.f32 %v985_v49  ;;  %v977_v17 = vsub.f32 %v945_v55, %v963_v15  ;;  %2936 = vmatprep.subr.bf16.mxu1 %v2935_v11  ;;  %v2939_v49 = vpack.c.bf16 %v1215_v1, %v1214_v16  ;;  %v1199_v16 = vld [vmem:[#allocation2 + $0x238] sm:$0xff] }
 0x7c0   :  { %v991_v18 = vmul.f32 1.442695, %v978_v13  ;;  %2938 = vmatpush3.bf16.msra.mxu1 %v2935_v11  ;;  %v1217_v13 = vld [vmem:[#allocation2 + $0x2c8] sm:$0xff]  ;;  %v1198_v11 = vld [vmem:[#allocation2 + $0x230] sm:$0xff] }
 0x7c1   :  { %v989_v20 = vmul.f32 1.442695, %v977_v17  ;;  %v972_v21 = vpop.xlane.xlu1 %971  ;;  %2940 = vmatprep.subr.bf16.mxu1 %v2939_v49  ;;  %v2943_v15 = vpack.c.bf16 %v1217_v13, %v1216_v12  ;;  %v1218_v17 = vld [vmem:[#allocation2 + $0x2d0] sm:$0xff]  ;;  %v2971_v12 = vpack.c.bf16 %v1199_v16, %v1198_v11  ;;  %v1389_v11 = vld [vmem:[#allocation2 + $0x378] sm:$0xff]  ;;  %v1390_v16 = vld [vmem:[#allocation2 + $0x380] sm:$0xff] }
 0x7c2   :  { %3131 = vpow2.f32 %v991_v18  ;;  %v980_v14 = vsub.f32 %v948_v32, %v972_v21  ;;  %v969_v22 = vpop.xlane.xlu0 %968  ;;  %v1219_v18 = vld [vmem:[#allocation2 + $0x2d8] sm:$0xff]  ;;  %v1220_v21 = vld [vmem:[#allocation2 + $0x2e0] sm:$0xff] }
 0x7c3   :  { %3133 = vpow2.f32 %v989_v20  ;;  %v979_v23 = vsub.f32 %v947_v0, %v969_v22  ;;  %v2947_v20 = vpack.c.bf16 %v1219_v18, %v1218_v17  ;;  %v1201_v17 = vld [vmem:[#allocation2 + $0x248] sm:$0xff] }
 0x7c4   :  { %v3124_v24 = vpop.eup %3123  ;;  %v995_v9 = vmul.f32 1.442695, %v980_v14  ;;  %2942 = vmatpush3.bf16.msra.mxu1 %v2939_v49  ;;  %v1221_v14 = vld [vmem:[#allocation2 + $0x2e8] sm:$0xff] }
 0x7c5   :  { %v3126_v25 = vpop.eup %3125  ;;  %v993_v28 = vmul.f32 1.442695, %v979_v23  ;;  %v1000_v29 = vsel %vm329_vm0, %v3124_v24, 0.0  ;;  %2944 = vmatprep.subr.bf16.mxu1 %v2943_v15  ;;  %v2951_v22 = vpack.c.bf16 %v1221_v14, %v1220_v21  ;;  %v1222_v23 = vld [vmem:[#allocation2 + $0x2f0] sm:$0xff]  ;;  %v1203_v21 = vld [vmem:[#allocation2 + $0x258] sm:$0xff] }
 0x7c6   :  { %3135 = vpow2.f32 %v995_v9  ;;  %1001 = vadd.xlane.f32.xlu1 %v1000_v29  ;;  %v997_v30 = vsel %vm329_vm0, %v3126_v25, 0.0  ;;  %v1224_v9 = vld [vmem:[#allocation2 + $0x300] sm:$0xff] }
 0x7c7   :  { %3137 = vpow2.f32 %v993_v28  ;;  %998 = vadd.xlane.f32.xlu0 %v997_v30  ;;  %v1225_v28 = vld [vmem:[#allocation2 + $0x308] sm:$0xff]  ;;  %v1226_v30 = vld [vmem:[#allocation2 + $0x310] sm:$0xff] }
 0x7c8   :  { %v3128_v42 = vpop.eup %3127  ;;  %2946 = vmatpush3.bf16.msra.mxu1 %v2943_v15  ;;  %v2959_v29 = vpack.c.bf16 %v1225_v28, %v1224_v9  ;;  %v1200_v15 = vld [vmem:[#allocation2 + $0x240] sm:$0xff]  ;;  %v1206_v9 = vld [vmem:[#allocation2 + $0x270] sm:$0xff] }
 0x7c9   :  { %v3130_v31 = vpop.eup %3129  ;;  %v1006_v33 = vsel %vm329_vm0, %v3128_v42, 0.0  ;;  %2948 = vmatprep.subr.bf16.mxu1 %v2947_v20  ;;  %v2975_v18 = vpack.c.bf16 %v1201_v17, %v1200_v15  ;;  %v1392_v15 = vld [vmem:[#allocation2 + $0x390] sm:$0xff] }
 0x7ca   :  { %1007 = vadd.xlane.f32.xlu1 %v1006_v33  ;;  %v1003_v43 = vsel %vm329_vm0, %v3130_v31, 0.0  ;;  %v1196_v33 = vld [vmem:[#allocation2 + $0x220] sm:$0xff] }
 0x7cb   :  { %1004 = vadd.xlane.f32.xlu0 %v1003_v43  ;;  %v1197_v43 = vld [vmem:[#allocation2 + $0x228] sm:$0xff] }
 0x7cc   :  { %v3132_v46 = vpop.eup %3131  ;;  %2950 = vmatpush3.bf16.msra.mxu1 %v2947_v20  ;;  %v1202_v20 = vld [vmem:[#allocation2 + $0x250] sm:$0xff] }
 0x7cd   :  { %v3134_v34 = vpop.eup %3133  ;;  %v1012_v44 = vsel %vm329_vm0, %v3132_v46, 0.0  ;;  %2952 = vmatprep.subr.bf16.mxu1 %v2951_v22  ;;  %v2979_v14 = vpack.c.bf16 %v1203_v21, %v1202_v20 }
 0x7ce   :  { %1013 = vadd.xlane.f32.xlu1 %v1012_v44  ;;  %v1009_v38 = vsel %vm329_vm0, %v3134_v34, 0.0 }
 0x7cf   :  { %1010 = vadd.xlane.f32.xlu0 %v1009_v38 }
 0x7d0   :  { %v3136_v45 = vpop.eup %3135  ;;  %2954 = vmatpush3.bf16.msra.mxu1 %v2951_v22  ;;  %v1204_v22 = vld [vmem:[#allocation2 + $0x260] sm:$0xff] }
 0x7d1   :  { %v3138_v35 = vpop.eup %3137  ;;  %v1018_v48 = vsel %vm329_vm0, %v3136_v45, 0.0 }
 0x7d2   :  { %1019 = vadd.xlane.f32.xlu1 %v1018_v48  ;;  %v1015_v50 = vsel %vm329_vm0, %v3138_v35, 0.0 }
 0x7d3   :  { %1016 = vadd.xlane.f32.xlu0 %v1015_v50 }
 0x853   :  { %v1002_v26 = vpop.xlane.xlu1 %1001 }
 0x854   :  { %3139 = vrcp.f32 %v1002_v26  ;;  %v999_v39 = vpop.xlane.xlu0 %998 }
 0x855   :  { %3141 = vrcp.f32 %v999_v39 }
 0x857   :  { %v1008_v56 = vpop.xlane.xlu1 %1007 }
 0x858   :  { %3143 = vrcp.f32 %v1008_v56  ;;  %v1005_v57 = vpop.xlane.xlu0 %1004 }
 0x859   :  { %3145 = vrcp.f32 %v1005_v57 }
 0x85b   :  { %v1014_v40 = vpop.xlane.xlu1 %1013 }
 0x85c   :  { %3147 = vrcp.f32 %v1014_v40  ;;  %v1011_v59 = vpop.xlane.xlu0 %1010 }
 0x85d   :  { %3149 = vrcp.f32 %v1011_v59 }
 0x85e   :  { %v3140_v60 = vpop.eup %3139 }
 0x85f   :  { %v3142_v54 = vpop.eup %3141  ;;  %v1020_v61 = vpop.xlane.xlu1 %1019  ;;  %v1030_v53 = vmul.f32 %v3140_v60, %v3124_v24  ;;  %v1223_v24 = vld [vmem:[#allocation2 + $0x2f8] sm:$0xff] }
 0x860   :  { %3151 = vrcp.f32 %v1020_v61  ;;  %v1017_v55 = vpop.xlane.xlu0 %1016  ;;  %v1029_v36 = vmul.f32 %v3142_v54, %v3126_v25  ;;  %v2955_v25 = vpack.c.bf16 %v1223_v24, %v1222_v23  ;;  %v1205_v23 = vld [vmem:[#allocation2 + $0x268] sm:$0xff] }
 0x861   :  { %3153 = vrcp.f32 %v1017_v55  ;;  %v2983_v24 = vpack.c.bf16 %v1205_v23, %v1204_v22 }
 0x862   :  { %v3144_v41 = vpop.eup %3143  ;;  %2642 = vmatprep.mubr.msk.f32.mxu0 %vm329_vm0, %v1029_v36  ;;  %2956 = vmatprep.subr.bf16.mxu1 %v2955_v25 }
 0x863   :  { %v3146_v63 = vpop.eup %3145  ;;  %2643 = vmatmul.mubr.msk.f32.vlgmr.msra.gmra.mrb[10].mxu0 %vm329_vm0, %v1030_v53  ;;  %v1032_v0 = vmul.f32 %v3144_v41, %v3128_v42  ;;  %v1227_v42 = vld [vmem:[#allocation2 + $0x318] sm:$0xff]  ;;  %2958 = vmatpush3.bf16.msra.mxu1 %v2955_v25 }
 0x864   :  { %v1031_v32 = vmul.f32 %v3146_v63, %v3130_v31  ;;  %2960 = vmatprep.subr.bf16.mxu1 %v2959_v29  ;;  %v2963_v31 = vpack.c.bf16 %v1227_v42, %v1226_v30  ;;  %v1181_v41 = vld [vmem:[#allocation2 + $0x218] sm:$0xff]  ;;  %v1209_v30 = vld [vmem:[#allocation2 + $0x288] sm:$0xff] }
 0x865   :  { %v1207_v25 = vld [vmem:[#allocation2 + $0x278] sm:$0xff] }
 0x866   :  { %v3148_v2 = vpop.eup %3147  ;;  %2645 = vmatprep.mubr.msk.f32.mxu0 %vm329_vm0, %v1031_v32  ;;  %v2987_v28 = vpack.c.bf16 %v1207_v25, %v1206_v9 }
 0x867   :  { %v3150_v5 = vpop.eup %3149  ;;  %2646 = vmatmul.mubr.msk.f32.gmra.mrb[12].mxu0 %vm329_vm0, %v1032_v0  ;;  %v1034_v47 = vmul.f32 %v3148_v2, %v3132_v46  ;;  %2962 = vmatpush3.bf16.msra.mxu1 %v2959_v29  ;;  %v2967_v46 = vpack.c.bf16 %v1197_v43, %v1196_v33  ;;  %v1180_v0 = vld [vmem:[#allocation2 + $0x210] sm:$0xff]  ;;  %v1208_v29 = vld [vmem:[#allocation2 + $0x280] sm:$0xff]  ;;  %v1211_v33 = vld [vmem:[#allocation2 + $0x298] sm:$0xff] }
 0x868   :  { %v1033_v62 = vmul.f32 %v3150_v5, %v3134_v34  ;;  %2964 = vmatprep.subr.bf16.mxu1 %v2963_v31  ;;  %v2991_v42 = vpack.c.bf16 %v1209_v30, %v1208_v29  ;;  %v3525_v29 = vld [vmem:[%s3645_s1 + $0x48] sm:$0xff]  ;;  %v3531_v30 = vld [vmem:[%s3645_s1 + $0x40] sm:$0xff] }
 0x86a   :  { %v3152_v52 = vpop.eup %3151  ;;  %2648 = vmatprep.mubr.msk.f32.mxu0 %vm329_vm0, %v1033_v62 }
 0x86b   :  { %v3154_v58 = vpop.eup %3153  ;;  %2649 = vmatmul.mubr.msk.f32.gmra.mrb[14].mxu0 %vm329_vm0, %v1034_v47  ;;  %v1036_v8 = vmul.f32 %v3152_v52, %v3136_v45  ;;  %2966 = vmatpush3.bf16.msra.mxu1 %v2963_v31  ;;  %v1210_v31 = vld [vmem:[#allocation2 + $0x290] sm:$0xff] }
 0x86c   :  { %v1035_v7 = vmul.f32 %v3154_v58, %v3138_v35  ;;  %2968 = vmatprep.subr.bf16.mxu1 %v2967_v46  ;;  %v2995_v43 = vpack.c.bf16 %v1211_v33, %v1210_v31 }
 0x86e   :  { %2651 = vmatprep.mubr.msk.f32.mxu0 %vm329_vm0, %v1035_v7 }
 0x86f   :  { %2652 = vmatmul.mubr.msk.f32.gmra.mrb[16].mxu0 %vm329_vm0, %v1036_v8 }
 0x936   :  { %v2644_v34 = vpop.f32.mrb[10].mxu0 }
 0x937   :  { %v1127_v44 = vpop.f32.mrb[11].mxu0  ;;  %v1167_v45 = vmul.f32 %v2644_v34, %v3428_v51  ;;  %v1866_v34 = vld [vmem:[#allocation2 + $0x430] sm:$0xff] }
 0x938   :  { %v1166_v50 = vmul.f32 %v3428_v51, %v1127_v44  ;;  %v1867_v44 = vld [vmem:[#allocation2 + $0x438] sm:$0xff] }
 0x93a   :  { %v2647_v38 = vpop.f32.mrb[12].mxu0 }
 0x93b   :  { %v1169_v35 = vmul.f32 %v2647_v38, %v3430_v19  ;;  %v1137_v48 = vpop.f32.mrb[13].mxu0 }
 0x93c   :  { %v1168_v26 = vmul.f32 %v3430_v19, %v1137_v48  ;;  %v3007_v48 = vpack.c.bf16 %v1867_v44, %v1866_v34 }
 0x93d   :  { %v1171_v39 = vadd.f32 %v1169_v35, %v1167_v45 }
 0x93e   :  { %v1170_v56 = vadd.f32 %v1168_v26, %v1166_v50  ;;  %v2650_v57 = vpop.f32.mrb[14].mxu0  ;;  %v1868_v50 = vld [vmem:[#allocation2 + $0x440] sm:$0xff]  ;;  %v1869_v26 = vld [vmem:[#allocation2 + $0x448] sm:$0xff] }
 0x93f   :  { %v1173_v40 = vmul.f32 %v2650_v57, %v3436_v27  ;;  %v1147_v59 = vpop.f32.mrb[15].mxu0  ;;  %v3011_v57 = vpack.c.bf16 %v1869_v26, %v1868_v50  ;;  %v3207_v26 = vld [vmem:[%s3645_s1 + $0x68] sm:$0xff] }
 0x940   :  { %v1172_v60 = vmul.f32 %v3436_v27, %v1147_v59  ;;  %v1871_v59 = vld [vmem:[#allocation2 + $0x458] sm:$0xff] }
 0x941   :  { %v1175_v54 = vadd.f32 %v1173_v40, %v1171_v39  ;;  %v1379_v39 = vld [vmem:[#allocation2 + $0x328] sm:$0xff]  ;;  %v1870_v40 = vld [vmem:[#allocation2 + $0x450] sm:$0xff] }
 0x942   :  { %v1174_v61 = vadd.f32 %v1172_v60, %v1170_v56  ;;  %v2653_v55 = vpop.f32.mrb[16].mxu0  ;;  %v1380_v56 = vld [vmem:[#allocation2 + $0x330] sm:$0xff]  ;;  %v1381_v60 = vld [vmem:[#allocation2 + $0x338] sm:$0xff] }
 0x943   :  { %v1177_v36 = vmul.f32 %v2653_v55, %v3440_v37  ;;  %v1157_v53 = vpop.f32.mrb[17].mxu0  ;;  %v1872_v55 = vld [vmem:[#allocation2 + $0x460] sm:$0xff] }
 0x944   :  { %v1176_v63 = vmul.f32 %v3440_v37, %v1157_v53  ;;  %v1383_v53 = vld [vmem:[#allocation2 + $0x348] sm:$0xff] }
 0x945   :  { %v1179_v32 = vadd.f32 %v1177_v36, %v1175_v54  ;;  %v1382_v54 = vld [vmem:[#allocation2 + $0x340] sm:$0xff]  ;;  %v1873_v36 = vld [vmem:[#allocation2 + $0x468] sm:$0xff] }
 0x946   :  { %v1178_v2 = vadd.f32 %v1176_v63, %v1174_v61  ;;  %v3015_v61 = vpack.c.bf16 %v1871_v59, %v1870_v40  ;;  %v3019_v63 = vpack.c.bf16 %v1873_v36, %v1872_v55 }
 0x947   :  { %v1183_v5 = vadd.f32 %v1181_v41, %v1179_v32  ;;  %v1384_v41 = vld [vmem:[#allocation2 + $0x350] sm:$0xff] }
 0x948   :  { %v1182_v62 = vadd.f32 %v1180_v0, %v1178_v2  ;;  %v1874_v32 = vld [vmem:[#allocation2 + $0x470] sm:$0xff]  ;;  %v1875_v0 = vld [vmem:[#allocation2 + $0x478] sm:$0xff] }
 0x949   :  { %v1187_v47 = vmin.f32 %v1183_v5, 0.0  ;;  %vm1185_vm14 = vcmp.gt.f32.partialorder %v1183_v5, 0.0  ;;  %v1385_v2 = vld [vmem:[#allocation2 + $0x358] sm:$0xff] }
 0x94a   :  { %v1186_v52 = vmin.f32 %v1182_v62, 0.0  ;;  %vm1184_vm13 = vcmp.gt.f32.partialorder %v1182_v62, 0.0 }
 0x94b   :  { %v1190_v58 = vmul.f32 1.442695, %v1187_v47  ;;  %v1876_v47 = vld [vmem:[#allocation2 + $0x480] sm:$0xff] }
 0x94c   :  { %v1188_v7 = vmul.f32 1.442695, %v1186_v52  ;;  %v1877_v52 = vld [vmem:[#allocation2 + $0x488] sm:$0xff] }
 0x94d   :  { %3155 = vpow2.f32 %v1190_v58  ;;  %v1387_v58 = vld [vmem:[#allocation2 + $0x368] sm:$0xff] }
 0x94e   :  { %3157 = vpow2.f32 %v1188_v7  ;;  %v1388_v7 = vld [vmem:[#allocation2 + $0x370] sm:$0xff] }
 0x957   :  { %v3156_v8 = vpop.eup %3155 }
 0x958   :  { %v3158_v10 = vpop.eup %3157  ;;  %v2281_v6 = vadd.f32 -1.0, %v3156_v8  ;;  %v3027_v8 = vpack.c.bf16 %v1877_v52, %v1876_v47 }
 0x959   :  { %v2280_v1 = vadd.f32 -1.0, %v3158_v10  ;;  %v1878_v10 = vld [vmem:[#allocation2 + $0x490] sm:$0xff] }
 0x95a   :  { %v1195_v13 = vsel %vm1185_vm14, %v1183_v5, %v2281_v6  ;;  %v1386_v5 = vld [vmem:[#allocation2 + $0x360] sm:$0xff]  ;;  %v1879_v6 = vld [vmem:[#allocation2 + $0x498] sm:$0xff] }
 0x95b   :  { %v1194_v49 = vsel %vm1184_vm13, %v1182_v62, %v2280_v1  ;;  %v3023_v62 = vpack.c.bf16 %v1875_v0, %v1874_v32  ;;  %v3031_v1 = vpack.c.bf16 %v1879_v6, %v1878_v10 }
 0x95c   :  { %2686 = vmatprep.mubr.f32.mxu1 %v1194_v49 }
 0x95d   :  { %2687 = vmatmul.mubr.f32.vlgmr.msra.gmra.mrb[34].mxu1 %v1195_v13 }
 0x95e   :  { %2970 = vmatpush3.bf16.msra.mxu1 %v2967_v46  ;;  %2721 = vmatprep.mubr.f32.mxu1 %v1194_v49  ;;  %v1378_v46 = vld [vmem:[#allocation2 + $0x320] sm:$0xff] }
 0x95f   :  { %2972 = vmatprep.subr.bf16.mxu1 %v2971_v12  ;;  %2728 = vmatprep.mubr.f32.mxu0 %v1378_v46  ;;  %v1880_v49 = vld [vmem:[#allocation2 + $0x4a0] sm:$0xff]  ;;  %v3205_v46 = vld [vmem:[%s3645_s1 + $0x58] sm:$0xff] }
 0x962   :  { %2974 = vmatpush3.bf16.msra.mxu1 %v2971_v12  ;;  %v1881_v12 = vld [vmem:[#allocation2 + $0x4a8] sm:$0xff] }
 0x963   :  { %2976 = vmatprep.subr.bf16.mxu1 %v2975_v18  ;;  %v3035_v17 = vpack.c.bf16 %v1881_v12, %v1880_v49 }
 0x966   :  { %2978 = vmatpush3.bf16.msra.mxu1 %v2975_v18  ;;  %v1393_v18 = vld [vmem:[#allocation2 + $0x398] sm:$0xff] }
 0x967   :  { %2980 = vmatprep.subr.bf16.mxu1 %v2979_v14 }
 0x96a   :  { %2982 = vmatpush3.bf16.msra.mxu1 %v2979_v14 }
 0x96b   :  { %2984 = vmatprep.subr.bf16.mxu1 %v2983_v24 }
 0x96e   :  { %2986 = vmatpush3.bf16.msra.mxu1 %v2983_v24 }
 0x96f   :  { %2988 = vmatprep.subr.bf16.mxu1 %v2987_v28 }
 0x972   :  { %2990 = vmatpush3.bf16.msra.mxu1 %v2987_v28 }
 0x973   :  { %2992 = vmatprep.subr.bf16.mxu1 %v2991_v42 }
 0x976   :  { %2994 = vmatpush3.bf16.msra.mxu1 %v2991_v42 }
 0x977   :  { %2996 = vmatprep.subr.bf16.mxu1 %v2995_v43 }
 0x97a   :  { %2998 = vmatpush3.bf16.msra.mxu1 %v2995_v43 }
 0x97d   :  { %2722 = vmatmul.mubr.f32.vlgmr.msra.gmra.mrb[34].mxu1 %v1195_v13  ;;  %v1391_v13 = vld [vmem:[#allocation2 + $0x388] sm:$0xff] }
 0xa50   :  { %v2723_v38 = vpop.f32.mrb[34].mxu1 }
 0xa51   :  { %v1369_v45 = vpop.f32.mrb[35].mxu1 }
 0xa52   :  { %v2999_v35 = vpack.c.bf16 %v2723_v38, %v1369_v45  ;;  %v3206_v38 = vld [vmem:[%s3645_s1 + $0x50] sm:$0xff] }
 0xa54   :  { %3000 = vmatprep.subr.bf16.mxu0 %v2999_v35  ;;  %3004 = vmatprep.subr.bf16.mxu1 %v2999_v35 }
 0xa55   :  { %3002 = vmatpush3.bf16.xpose.msra.mxu0 %v2999_v35  ;;  %3006 = vmatpush3.bf16.msra.mxu1 %v2999_v35 }
 0xa56   :  { %3008 = vmatprep.subr.bf16.mxu0 %v3007_v48 }
 0xa5c   :  { %2729 = vmatmul.mubr.f32.vlgmr.msra.gmra.mrb[18].mxu0 %v1379_v39 }
 0xa5d   :  { %3010 = vmatpush3.bf16.msra.mxu0 %v3007_v48  ;;  %2731 = vmatprep.mubr.f32.mxu0 %v1380_v56 }
 0xa5e   :  { %3012 = vmatprep.subr.bf16.mxu0 %v3011_v57 }
 0xa60   :  { %2732 = vmatmul.mubr.f32.gmra.mrb[20].mxu0 %v1381_v60 }
 0xa61   :  { %3014 = vmatpush3.bf16.msra.mxu0 %v3011_v57  ;;  %2734 = vmatprep.mubr.f32.mxu0 %v1382_v54  ;;  %v3208_v57 = vld [vmem:[%s3645_s1 + $0x60] sm:$0xff] }
 0xa62   :  { %3016 = vmatprep.subr.bf16.mxu0 %v3015_v61 }
 0xa64   :  { %2735 = vmatmul.mubr.f32.gmra.mrb[22].mxu0 %v1383_v53  ;;  %v3210_v53 = vld [vmem:[%s3645_s1 + $0x70] sm:$0xff] }
 0xa65   :  { %3018 = vmatpush3.bf16.msra.mxu0 %v3015_v61  ;;  %2737 = vmatprep.mubr.f32.mxu0 %v1384_v41  ;;  %v3209_v61 = vld [vmem:[%s3645_s1 + $0x78] sm:$0xff] }
 0xa66   :  { %3020 = vmatprep.subr.bf16.mxu0 %v3019_v63 }
 0xa68   :  { %2738 = vmatmul.mubr.f32.gmra.mrb[24].mxu0 %v1385_v2 }
 0xa69   :  { %3022 = vmatpush3.bf16.msra.mxu0 %v3019_v63  ;;  %2740 = vmatprep.mubr.f32.mxu0 %v1386_v5 }
 0xa6a   :  { %3024 = vmatprep.subr.bf16.mxu0 %v3023_v62 }
 0xa6c   :  { %2741 = vmatmul.mubr.f32.gmra.mrb[26].mxu0 %v1387_v58 }
 0xa6d   :  { %3026 = vmatpush3.bf16.msra.mxu0 %v3023_v62  ;;  %2743 = vmatprep.mubr.f32.mxu0 %v1388_v7 }
 0xa6e   :  { %3028 = vmatprep.subr.bf16.mxu0 %v3027_v8 }
 0xa70   :  { %2744 = vmatmul.mubr.f32.gmra.mrb[28].mxu0 %v1389_v11 }
 0xa71   :  { %3030 = vmatpush3.bf16.msra.mxu0 %v3027_v8  ;;  %2746 = vmatprep.mubr.f32.mxu0 %v1390_v16 }
 0xa72   :  { %3032 = vmatprep.subr.bf16.mxu0 %v3031_v1 }
 0xa74   :  { %2747 = vmatmul.mubr.f32.gmra.mrb[30].mxu0 %v1391_v13 }
 0xa75   :  { %3034 = vmatpush3.bf16.msra.mxu0 %v3031_v1  ;;  %2749 = vmatprep.mubr.f32.mxu0 %v1392_v15  ;;  %v3563_v1 = vld [vmem:[%s3645_s1 + $0x8] sm:$0xff]  ;;  %v3569_v15 = vld [vmem:[%s3645_s1] sm:$0xff] }
 0xa76   :  { %3036 = vmatprep.subr.bf16.mxu0 %v3035_v17 }
 0xa78   :  { %2750 = vmatmul.mubr.f32.gmra.mrb[32].mxu0 %v1393_v18 }
 0xa79   :  { %3038 = vmatpush3.bf16.msra.mxu0 %v3035_v17  ;;  %2800 = vmatprep.mubr.f32.mxu0 %v3444_v3 }
 0xa7c   :  { %2801 = vmatmul.mubr.f32.vlgmr.msra.gmra.mrb[34].mxu0 %v3447_v4 }
 0xb2f   :  { %v2730_v20 = vpop.f32.mrb[18].mxu0 }
 0xb30   :  { %v1460_v21 = vpop.f32.mrb[19].mxu0 }
 0xb33   :  { %v2733_v14 = vpop.f32.mrb[20].mxu0 }
 0xb34   :  { %v1470_v22 = vpop.f32.mrb[21].mxu0 }
 0xb37   :  { %v3514_v23 = vpop.f32.mrb[22].mxu0 }
 0xb38   :  { %v3516_v24 = vpop.f32.mrb[23].mxu0 }
 0xb3b   :  { %v3518_v9 = vpop.f32.mrb[24].mxu0 }
 0xb3c   :  { %v3520_v25 = vpop.f32.mrb[25].mxu0 }
 0xb3f   :  { %v2742_v28 = vpop.f32.mrb[26].mxu0 }
 0xb40   :  { %v1540_v3 = vmul.f32 %v3525_v29, %v2742_v28  ;;  %v1500_v4 = vpop.f32.mrb[27].mxu0 }
 0xb41   :  { %v1539_v42 = vmul.f32 %v3531_v30, %v1500_v4 }
 0xb42   :  { %v1550_v31 = vsel %vm329_vm0, %v1540_v3, 0.0 }
 0xb43   :  { %1551 = vadd.xlane.f32.xlu1 %v1550_v31  ;;  %v2745_v33 = vpop.f32.mrb[28].mxu0  ;;  %v1547_v43 = vsel %vm329_vm0, %v1539_v42, 0.0  ;;  %v3213_v42 = vld [vmem:[%s3645_s1 + $0x18] sm:$0xff] }
 0xb44   :  { %v1542_v34 = vmul.f32 %v3205_v46, %v2745_v33  ;;  %1548 = vadd.xlane.f32.xlu0 %v1547_v43  ;;  %v1510_v44 = vpop.f32.mrb[29].mxu0 }
 0xb45   :  { %v1541_v45 = vmul.f32 %v3206_v38, %v1510_v44 }
 0xb46   :  { %v1556_v35 = vsel %vm329_vm0, %v1542_v34, 0.0 }
 0xb47   :  { %1557 = vadd.xlane.f32.xlu1 %v1556_v35  ;;  %v2748_v48 = vpop.f32.mrb[30].mxu0  ;;  %v1553_v50 = vsel %vm329_vm0, %v1541_v45, 0.0 }
 0xb48   :  { %v1544_v39 = vmul.f32 %v3207_v26, %v2748_v48  ;;  %1554 = vadd.xlane.f32.xlu0 %v1553_v50  ;;  %v1520_v56 = vpop.f32.mrb[31].mxu0  ;;  %v3215_v26 = vld [vmem:[%s3645_s1 + $0x28] sm:$0xff] }
 0xb49   :  { %v1543_v40 = vmul.f32 %v3208_v57, %v1520_v56 }
 0xb4a   :  { %v1562_v59 = vsel %vm329_vm0, %v1544_v39, 0.0 }
 0xb4b   :  { %1563 = vadd.xlane.f32.xlu1 %v1562_v59  ;;  %v2751_v60 = vpop.f32.mrb[32].mxu0  ;;  %v1559_v54 = vsel %vm329_vm0, %v1543_v40, 0.0 }
 0xb4c   :  { %v1546_v55 = vmul.f32 %v3209_v61, %v2751_v60  ;;  %1560 = vadd.xlane.f32.xlu0 %v1559_v54  ;;  %v1530_v36 = vpop.f32.mrb[33].mxu0  ;;  %v3217_v54 = vld [vmem:[%s3645_s1 + $0x38] sm:$0xff] }
 0xb4d   :  { %v1545_v41 = vmul.f32 %v3210_v53, %v1530_v36 }
 0xb4e   :  { %v1568_v63 = vsel %vm329_vm0, %v1546_v55, 0.0  ;;  %v3218_v55 = vld [vmem:[%s3645_s1 + $0x30] sm:$0xff] }
 0xb4f   :  { %1569 = vadd.xlane.f32.xlu1 %v1568_v63  ;;  %v1565_v32 = vsel %vm329_vm0, %v1545_v41, 0.0 }
 0xb50   :  { %1566 = vadd.xlane.f32.xlu0 %v1565_v32 }
 0xbd0   :  { %v1552_v0 = vpop.xlane.xlu1 %1551 }
 0xbd1   :  { %v1572_v2 = vadd.f32 %v2730_v20, %v1552_v0  ;;  %v1549_v5 = vpop.xlane.xlu0 %1548 }
 0xbd2   :  { %v1571_v62 = vadd.f32 %v1549_v5, %v1460_v21 }
 0xbd3   :  { %v1580_v47 = vmul.f32 0.2, %v1572_v2 }
 0xbd4   :  { %v1579_v52 = vmul.f32 0.2, %v1571_v62  ;;  %v1558_v58 = vpop.xlane.xlu1 %1557 }
 0xbd5   :  { %v1588_v7 = vmax.f32 %v1572_v2, %v1580_v47  ;;  %v1574_v8 = vadd.f32 %v2733_v14, %v1558_v58  ;;  %v1555_v10 = vpop.xlane.xlu0 %1554 }
 0xbd6   :  { %v1587_v6 = vmax.f32 %v1571_v62, %v1579_v52  ;;  %v1573_v11 = vadd.f32 %v1555_v10, %v1470_v22 }
 0xbd7   :  { %v1582_v16 = vmul.f32 0.2, %v1574_v8  ;;  %v1596_v49 = vadd.f32 %v3563_v1, %v1588_v7 }
 0xbd8   :  { %v1581_v12 = vmul.f32 0.2, %v1573_v11  ;;  %v1564_v13 = vpop.xlane.xlu1 %1563  ;;  %v1595_v17 = vadd.f32 %v3569_v15, %v1587_v6 }
 0xbd9   :  { %v1590_v18 = vmax.f32 %v1574_v8, %v1582_v16  ;;  %v1576_v20 = vadd.f32 %v3514_v23, %v1564_v13  ;;  %v1561_v21 = vpop.xlane.xlu0 %1560  ;;  %v1606_v14 = vsel %vm329_vm0, %v1596_v49, -inf  ;;  %v3214_v23 = vld [vmem:[%s3645_s1 + $0x10] sm:$0xff] }
 0xbda   :  { %v1589_v22 = vmax.f32 %v1573_v11, %v1581_v12  ;;  %v1575_v28 = vadd.f32 %v1561_v21, %v3516_v24  ;;  %1607 = vmax.xlane.f32.xlu1 %v1606_v14  ;;  %v1603_v3 = vsel %vm329_vm0, %v1595_v17, -inf }
 0xbdb   :  { %v1584_v4 = vmul.f32 0.2, %v1576_v20  ;;  %1604 = vmax.xlane.f32.xlu0 %v1603_v3  ;;  %v1598_v31 = vadd.f32 %v3213_v42, %v1590_v18 }
 0xbdc   :  { %v1583_v33 = vmul.f32 0.2, %v1575_v28  ;;  %v1570_v43 = vpop.xlane.xlu1 %1569  ;;  %v1597_v46 = vadd.f32 %v3214_v23, %v1589_v22 }
 0xbdd   :  { %v1592_v34 = vmax.f32 %v1576_v20, %v1584_v4  ;;  %v1578_v24 = vadd.f32 %v3518_v9, %v1570_v43  ;;  %v1567_v44 = vpop.xlane.xlu0 %1566  ;;  %v1612_v38 = vsel %vm329_vm0, %v1598_v31, -inf  ;;  %v3216_v9 = vld [vmem:[%s3645_s1 + $0x20] sm:$0xff] }
 0xbde   :  { %v1591_v45 = vmax.f32 %v1575_v28, %v1583_v33  ;;  %v1577_v35 = vadd.f32 %v1567_v44, %v3520_v25  ;;  %1613 = vmax.xlane.f32.xlu1 %v1612_v38  ;;  %v1609_v48 = vsel %vm329_vm0, %v1597_v46, -inf }
 0xbdf   :  { %v1586_v50 = vmul.f32 0.2, %v1578_v24  ;;  %1610 = vmax.xlane.f32.xlu0 %v1609_v48  ;;  %v1600_v39 = vadd.f32 %v3215_v26, %v1592_v34 }
 0xbe0   :  { %v1585_v56 = vmul.f32 0.2, %v1577_v35  ;;  %v1599_v57 = vadd.f32 %v3216_v9, %v1591_v45 }
 0xbe1   :  { %v1594_v40 = vmax.f32 %v1578_v24, %v1586_v50  ;;  %v1618_v59 = vsel %vm329_vm0, %v1600_v39, -inf }
 0xbe2   :  { %v1593_v25 = vmax.f32 %v1577_v35, %v1585_v56  ;;  %1619 = vmax.xlane.f32.xlu1 %v1618_v59  ;;  %v1615_v60 = vsel %vm329_vm0, %v1599_v57, -inf }
 0xbe3   :  { %1616 = vmax.xlane.f32.xlu0 %v1615_v60  ;;  %v1602_v61 = vadd.f32 %v3217_v54, %v1594_v40 }
 0xbe4   :  { %v1601_v36 = vadd.f32 %v3218_v55, %v1593_v25 }
 0xbe5   :  { %v1624_v53 = vsel %vm329_vm0, %v1602_v61, -inf }
 0xbe6   :  { %1625 = vmax.xlane.f32.xlu1 %v1624_v53  ;;  %v1621_v41 = vsel %vm329_vm0, %v1601_v36, -inf }
 0xbe7   :  { %1622 = vmax.xlane.f32.xlu0 %v1621_v41 }
 0xc67   :  { %v1608_v63 = vpop.xlane.xlu1 %1607 }
 0xc68   :  { %v1628_v32 = vsub.f32 %v1596_v49, %v1608_v63  ;;  %v1605_v0 = vpop.xlane.xlu0 %1604 }
 0xc69   :  { %v1627_v2 = vsub.f32 %v1595_v17, %v1605_v0 }
 0xc6a   :  { %v1637_v5 = vmul.f32 1.442695, %v1628_v32 }
 0xc6b   :  { %v1635_v62 = vmul.f32 1.442695, %v1627_v2  ;;  %v1614_v47 = vpop.xlane.xlu1 %1613 }
 0xc6c   :  { %3159 = vpow2.f32 %v1637_v5  ;;  %v1630_v52 = vsub.f32 %v1598_v31, %v1614_v47  ;;  %v1611_v58 = vpop.xlane.xlu0 %1610 }
 0xc6d   :  { %3161 = vpow2.f32 %v1635_v62  ;;  %v1629_v7 = vsub.f32 %v1597_v46, %v1611_v58  ;;  %v1850_v58 = vld [vmem:[#allocation2 + $0x3b0] sm:$0xff] }
 0xc6e   :  { %v1641_v8 = vmul.f32 1.442695, %v1630_v52 }
 0xc6f   :  { %v1639_v10 = vmul.f32 1.442695, %v1629_v7  ;;  %v1620_v6 = vpop.xlane.xlu1 %1619  ;;  %v1851_v7 = vld [vmem:[#allocation2 + $0x3b8] sm:$0xff] }
 0xc70   :  { %3163 = vpow2.f32 %v1641_v8  ;;  %v1632_v11 = vsub.f32 %v1600_v39, %v1620_v6  ;;  %v1617_v16 = vpop.xlane.xlu0 %1616  ;;  %v3039_v8 = vpack.c.bf16 %v1851_v7, %v1850_v58  ;;  %v1853_v6 = vld [vmem:[#allocation2 + $0x3c8] sm:$0xff]  ;;  %v2032_v58 = vld [vmem:[#allocation2 + $0x4b0] sm:$0xff] }
 0xc71   :  { %3165 = vpow2.f32 %v1639_v10  ;;  %v1631_v12 = vsub.f32 %v1599_v57, %v1617_v16  ;;  %v1852_v10 = vld [vmem:[#allocation2 + $0x3c0] sm:$0xff]  ;;  %v1854_v16 = vld [vmem:[#allocation2 + $0x3d0] sm:$0xff] }
 0xc72   :  { %v1645_v13 = vmul.f32 1.442695, %v1632_v11  ;;  %3040 = vmatprep.subr.bf16.mxu0 %v3039_v8  ;;  %v3043_v11 = vpack.c.bf16 %v1853_v6, %v1852_v10  ;;  %v2033_v6 = vld [vmem:[#allocation2 + $0x4b8] sm:$0xff] }
 0xc73   :  { %v1643_v49 = vmul.f32 1.442695, %v1631_v12  ;;  %v1626_v18 = vpop.xlane.xlu1 %1625  ;;  %3042 = vmatpush3.bf16.msra.mxu0 %v3039_v8  ;;  %v1855_v12 = vld [vmem:[#allocation2 + $0x3d8] sm:$0xff] }
 0xc74   :  { %3167 = vpow2.f32 %v1645_v13  ;;  %v1634_v17 = vsub.f32 %v1602_v61, %v1626_v18  ;;  %v1623_v20 = vpop.xlane.xlu0 %1622  ;;  %3044 = vmatprep.subr.bf16.mxu0 %v3043_v11  ;;  %v3047_v13 = vpack.c.bf16 %v1855_v12, %v1854_v16  ;;  %v1857_v18 = vld [vmem:[#allocation2 + $0x3e8] sm:$0xff] }
 0xc75   :  { %3169 = vpow2.f32 %v1643_v49  ;;  %v1633_v21 = vsub.f32 %v1601_v36, %v1623_v20  ;;  %v1856_v49 = vld [vmem:[#allocation2 + $0x3e0] sm:$0xff]  ;;  %v1858_v20 = vld [vmem:[#allocation2 + $0x3f0] sm:$0xff]  ;;  %v2035_v16 = vld [vmem:[#allocation2 + $0x4c8] sm:$0xff] }
 0xc76   :  { %v3160_v14 = vpop.eup %3159  ;;  %v1649_v22 = vmul.f32 1.442695, %v1634_v17  ;;  %v3051_v17 = vpack.c.bf16 %v1857_v18, %v1856_v49 }
 0xc77   :  { %v3162_v28 = vpop.eup %3161  ;;  %v1647_v3 = vmul.f32 1.442695, %v1633_v21  ;;  %v1654_v4 = vsel %vm329_vm0, %v3160_v14, 0.0  ;;  %3046 = vmatpush3.bf16.msra.mxu0 %v3043_v11  ;;  %v1859_v21 = vld [vmem:[#allocation2 + $0x3f8] sm:$0xff]  ;;  %v2034_v11 = vld [vmem:[#allocation2 + $0x4c0] sm:$0xff] }
 0xc78   :  { %3171 = vpow2.f32 %v1649_v22  ;;  %1655 = vadd.xlane.f32.xlu1 %v1654_v4  ;;  %v1651_v42 = vsel %vm329_vm0, %v3162_v28, 0.0  ;;  %3048 = vmatprep.subr.bf16.mxu0 %v3047_v13  ;;  %v1860_v22 = vld [vmem:[#allocation2 + $0x400] sm:$0xff] }
 0xc79   :  { %3173 = vpow2.f32 %v1647_v3  ;;  %1652 = vadd.xlane.f32.xlu0 %v1651_v42  ;;  %v1862_v3 = vld [vmem:[#allocation2 + $0x410] sm:$0xff]  ;;  %v1863_v42 = vld [vmem:[#allocation2 + $0x418] sm:$0xff] }
 0xc7a   :  { %v3164_v31 = vpop.eup %3163 }
 0xc7b   :  { %v3166_v33 = vpop.eup %3165  ;;  %v1660_v43 = vsel %vm329_vm0, %v3164_v31, 0.0  ;;  %3050 = vmatpush3.bf16.msra.mxu0 %v3047_v13 }
 0xc7c   :  { %1661 = vadd.xlane.f32.xlu1 %v1660_v43  ;;  %v1657_v23 = vsel %vm329_vm0, %v3166_v33, 0.0  ;;  %3052 = vmatprep.subr.bf16.mxu0 %v3051_v17  ;;  %v1865_v43 = vld [vmem:[#allocation2 + $0x428] sm:$0xff] }
 0xc7d   :  { %1658 = vadd.xlane.f32.xlu0 %v1657_v23 }
 0xc7e   :  { %v3168_v46 = vpop.eup %3167 }
 0xc7f   :  { %v3170_v34 = vpop.eup %3169  ;;  %v1666_v24 = vsel %vm329_vm0, %v3168_v46, 0.0  ;;  %3054 = vmatpush3.bf16.msra.mxu0 %v3051_v17 }
 0xc80   :  { %1667 = vadd.xlane.f32.xlu1 %v1666_v24  ;;  %v1663_v44 = vsel %vm329_vm0, %v3170_v34, 0.0 }
 0xc81   :  { %1664 = vadd.xlane.f32.xlu0 %v1663_v44 }
 0xc82   :  { %v3172_v38 = vpop.eup %3171 }
 0xc83   :  { %v3174_v45 = vpop.eup %3173  ;;  %v1672_v35 = vsel %vm329_vm0, %v3172_v38, 0.0 }
 0xc84   :  { %1673 = vadd.xlane.f32.xlu1 %v1672_v35  ;;  %v1669_v48 = vsel %vm329_vm0, %v3174_v45, 0.0 }
 0xc85   :  { %1670 = vadd.xlane.f32.xlu0 %v1669_v48 }
 0xd05   :  { %v1656_v50 = vpop.xlane.xlu1 %1655 }
 0xd06   :  { %3175 = vrcp.f32 %v1656_v50  ;;  %v1653_v26 = vpop.xlane.xlu0 %1652 }
 0xd07   :  { %3177 = vrcp.f32 %v1653_v26 }
 0xd09   :  { %v1662_v39 = vpop.xlane.xlu1 %1661 }
 0xd0a   :  { %3179 = vrcp.f32 %v1662_v39  ;;  %v1659_v56 = vpop.xlane.xlu0 %1658 }
 0xd0b   :  { %3181 = vrcp.f32 %v1659_v56 }
 0xd0d   :  { %v1668_v9 = vpop.xlane.xlu1 %1667 }
 0xd0e   :  { %3183 = vrcp.f32 %v1668_v9  ;;  %v1665_v57 = vpop.xlane.xlu0 %1664 }
 0xd0f   :  { %3185 = vrcp.f32 %v1665_v57 }
 0xd10   :  { %v3176_v40 = vpop.eup %3175 }
 0xd11   :  { %v3178_v59 = vpop.eup %3177  ;;  %v1674_v25 = vpop.xlane.xlu1 %1673  ;;  %v1684_v61 = vmul.f32 %v3176_v40, %v3160_v14  ;;  %v3055_v14 = vpack.c.bf16 %v1859_v21, %v1858_v20 }
 0xd12   :  { %3187 = vrcp.f32 %v1674_v25  ;;  %v1671_v60 = vpop.xlane.xlu0 %1670  ;;  %v1683_v54 = vmul.f32 %v3178_v59, %v3162_v28  ;;  %v1861_v28 = vld [vmem:[#allocation2 + $0x408] sm:$0xff] }
 0xd13   :  { %3189 = vrcp.f32 %v1671_v60  ;;  %3056 = vmatprep.subr.bf16.mxu0 %v3055_v14  ;;  %v3059_v4 = vpack.c.bf16 %v1861_v28, %v1860_v22 }
 0xd14   :  { %v3180_v55 = vpop.eup %3179  ;;  %2756 = vmatprep.mubr.msk.f32.mxu1 %vm329_vm0, %v1683_v54  ;;  %3058 = vmatpush3.bf16.msra.mxu0 %v3055_v14 }
 0xd15   :  { %v3182_v36 = vpop.eup %3181  ;;  %2757 = vmatmul.mubr.msk.f32.vlgmr.msra.gmra.mrb[36].mxu1 %vm329_vm0, %v1684_v61  ;;  %v1686_v41 = vmul.f32 %v3180_v55, %v3164_v31  ;;  %v3063_v31 = vpack.c.bf16 %v1863_v42, %v1862_v3  ;;  %3060 = vmatprep.subr.bf16.mxu0 %v3059_v4  ;;  %v1835_v61 = vld [vmem:[#allocation2 + $0x3a8] sm:$0xff] }
 0xd16   :  { %v1685_v53 = vmul.f32 %v3182_v36, %v3166_v33  ;;  %v1864_v33 = vld [vmem:[#allocation2 + $0x420] sm:$0xff] }
 0xd17   :  { %v3067_v23 = vpack.c.bf16 %v1865_v43, %v1864_v33  ;;  %v1834_v36 = vld [vmem:[#allocation2 + $0x3a0] sm:$0xff] }
 0xd18   :  { %v3184_v63 = vpop.eup %3183  ;;  %2759 = vmatprep.mubr.msk.f32.mxu1 %vm329_vm0, %v1685_v53  ;;  %3062 = vmatpush3.bf16.msra.mxu0 %v3059_v4 }
 0xd19   :  { %v3186_v32 = vpop.eup %3185  ;;  %2760 = vmatmul.mubr.msk.f32.gmra.mrb[38].mxu1 %vm329_vm0, %v1686_v41  ;;  %v1688_v2 = vmul.f32 %v3184_v63, %v3168_v46  ;;  %3064 = vmatprep.subr.bf16.mxu0 %v3063_v31 }
 0xd1a   :  { %v1687_v0 = vmul.f32 %v3186_v32, %v3170_v34 }
 0xd1c   :  { %v3188_v5 = vpop.eup %3187  ;;  %2762 = vmatprep.mubr.msk.f32.mxu1 %vm329_vm0, %v1687_v0  ;;  %3066 = vmatpush3.bf16.msra.mxu0 %v3063_v31 }
 0xd1d   :  { %v3190_v62 = vpop.eup %3189  ;;  %2763 = vmatmul.mubr.msk.f32.gmra.mrb[40].mxu1 %vm329_vm0, %v1688_v2  ;;  %v1690_v52 = vmul.f32 %v3188_v5, %v3172_v38  ;;  %3068 = vmatprep.subr.bf16.mxu0 %v3067_v23 }
 0xd1e   :  { %v1689_v47 = vmul.f32 %v3190_v62, %v3174_v45 }
 0xd20   :  { %2765 = vmatprep.mubr.msk.f32.mxu1 %vm329_vm0, %v1689_v47  ;;  %3070 = vmatpush3.bf16.msra.mxu0 %v3067_v23 }
 0xd21   :  { %2766 = vmatmul.mubr.msk.f32.gmra.mrb[42].mxu1 %vm329_vm0, %v1690_v52 }
 0xd22   :  { %2842 = vmatprep.mubr.f32.mxu1 %v2032_v58 }
 0xde8   :  { %v2758_v46 = vpop.f32.mrb[36].mxu1 }
 0xde9   :  { %v1781_v34 = vpop.f32.mrb[37].mxu1  ;;  %v1821_v44 = vmul.f32 %v2758_v46, %v3428_v51 }
 0xdea   :  { %v1820_v35 = vmul.f32 %v3428_v51, %v1781_v34 }
 0xdec   :  { %v2761_v24 = vpop.f32.mrb[38].mxu1 }
 0xded   :  { %v1823_v38 = vmul.f32 %v2761_v24, %v3430_v19  ;;  %v1791_v45 = vpop.f32.mrb[39].mxu1 }
 0xdee   :  { %v1822_v48 = vmul.f32 %v3430_v19, %v1791_v45 }
 0xdef   :  { %v1825_v50 = vadd.f32 %v1823_v38, %v1821_v44 }
 0xdf0   :  { %v1824_v26 = vadd.f32 %v1822_v48, %v1820_v35  ;;  %v2764_v39 = vpop.f32.mrb[40].mxu1 }
 0xdf1   :  { %v1827_v56 = vmul.f32 %v2764_v39, %v3436_v27  ;;  %v1801_v9 = vpop.f32.mrb[41].mxu1 }
 0xdf2   :  { %v1826_v57 = vmul.f32 %v3436_v27, %v1801_v9 }
 0xdf3   :  { %v1829_v40 = vadd.f32 %v1827_v56, %v1825_v50 }
 0xdf4   :  { %v1828_v59 = vadd.f32 %v1826_v57, %v1824_v26  ;;  %v2767_v25 = vpop.f32.mrb[42].mxu1 }
 0xdf5   :  { %v1831_v60 = vmul.f32 %v2767_v25, %v3440_v37  ;;  %v1811_v54 = vpop.f32.mrb[43].mxu1  ;;  %v2159_v25 = vld [vmem:[#allocation2 + $0x4d0] sm:$0xff] }
 0xdf6   :  { %v1830_v55 = vmul.f32 %v3440_v37, %v1811_v54 }
 0xdf7   :  { %v1833_v51 = vadd.f32 %v1831_v60, %v1829_v40 }
 0xdf8   :  { %v1832_v19 = vadd.f32 %v1830_v55, %v1828_v59  ;;  %v2160_v59 = vld [vmem:[#allocation2 + $0x4d8] sm:$0xff] }
 0xdf9   :  { %v1837_v53 = vadd.f32 %v1835_v61, %v1833_v51 }
 0xdfa   :  { %v1836_v41 = vadd.f32 %v1834_v36, %v1832_v19 }
 0xdfb   :  { %v1841_v63 = vmin.f32 %v1837_v53, 0.0  ;;  %vm1839_vm1 = vcmp.gt.f32.partialorder %v1837_v53, 0.0 }
 0xdfc   :  { %v1840_v32 = vmin.f32 %v1836_v41, 0.0  ;;  %vm1838_vm15 = vcmp.gt.f32.partialorder %v1836_v41, 0.0 }
 0xdfd   :  { %v1844_v0 = vmul.f32 1.442695, %v1841_v63 }
 0xdfe   :  { %v1842_v2 = vmul.f32 1.442695, %v1840_v32 }
 0xdff   :  { %3191 = vpow2.f32 %v1844_v0 }
 0xe00   :  { %3193 = vpow2.f32 %v1842_v2 }
 0xe09   :  { %v3192_v27 = vpop.eup %3191 }
 0xe0a   :  { %v3194_v5 = vpop.eup %3193  ;;  %v2291_v62 = vadd.f32 -1.0, %v3192_v27 }
 0xe0b   :  { %v2290_v47 = vadd.f32 -1.0, %v3194_v5 }
 0xe0c   :  { %v1849_v37 = vsel %vm1839_vm1, %v1837_v53, %v2291_v62 }
 0xe0d   :  { %v1848_v52 = vsel %vm1838_vm15, %v1836_v41, %v2290_v47 }
 0xe0e   :  { %2835 = vmatprep.mubr.f32.mxu0 %v1848_v52 }
 0xe0f   :  { %2836 = vmatmul.mubr.f32.vlgmr.msra.gmra.mrb[34].mxu0 %v1849_v37 }
 0xee2   :  { %v2837_v7 = vpop.f32.mrb[34].mxu0 }
 0xee3   :  { %v2023_v8 = vpop.f32.mrb[35].mxu0 }
 0xee4   :  { %v3071_v10 = vpack.c.bf16 %v2837_v7, %v2023_v8 }
 0xee6   :  { %3072 = vmatprep.subr.bf16.mxu1 %v3071_v10  ;;  %3076 = vmatprep.subr.bf16.mxu0 %v3071_v10 }
 0xee7   :  { %3074 = vmatpush3.bf16.xpose.msra.mxu1 %v3071_v10  ;;  %3078 = vmatpush3.bf16.msra.mxu0 %v3071_v10 }
 0xeee   :  { %2843 = vmatmul.mubr.f32.vlgmr.msra.gmra.mrb[44].mxu1 %v2033_v6 }
 0xeef   :  { %2845 = vmatprep.mubr.f32.mxu1 %v2034_v11 }
 0xef2   :  { %2846 = vmatmul.mubr.f32.gmra.mrb[46].mxu1 %v2035_v16 }
 0xfc1   :  { %v2844_v12 = vpop.f32.mrb[44].mxu1 }
 0xfc2   :  { %v2102_v13 = vpop.f32.mrb[45].mxu1 }
 0xfc5   :  { %v2847_v49 = vpop.f32.mrb[46].mxu1 }
 0xfc6   :  { %v2122_v18 = vmul.f32 %v3525_v29, %v2847_v49  ;;  %v2112_v17 = vpop.f32.mrb[47].mxu1 }
 0xfc7   :  { %v2121_v20 = vmul.f32 %v3531_v30, %v2112_v17 }
 0xfc8   :  { %v2126_v21 = vsel %vm329_vm0, %v2122_v18, 0.0 }
 0xfc9   :  { %2127 = vadd.xlane.f32.xlu1 %v2126_v21  ;;  %v2123_v14 = vsel %vm329_vm0, %v2121_v20, 0.0 }
 0xfca   :  { %2124 = vadd.xlane.f32.xlu0 %v2123_v14 }
0x1056   :  { %v2128_v22 = vpop.xlane.xlu1 %2127 }
0x1057   :  { %v2130_v28 = vadd.f32 %v2844_v12, %v2128_v22  ;;  %v2125_v3 = vpop.xlane.xlu0 %2124 }
0x1058   :  { %v2129_v4 = vadd.f32 %v2125_v3, %v2102_v13 }
0x1059   :  { %v2132_v42 = vmul.f32 0.2, %v2130_v28 }
0x105a   :  { %v2131_v31 = vmul.f32 0.2, %v2129_v4 }
0x105b   :  { %v2134_v33 = vmax.f32 %v2130_v28, %v2132_v42 }
0x105c   :  { %v2133_v43 = vmax.f32 %v2129_v4, %v2131_v31 }
0x105d   :  { %v2136_v23 = vadd.f32 %v3563_v1, %v2134_v33 }
0x105e   :  { %v2135_v29 = vadd.f32 %v3569_v15, %v2133_v43 }
0x105f   :  { %v2140_v30 = vsel %vm329_vm0, %v2136_v23, -inf }
0x1060   :  { %2141 = vmax.xlane.f32.xlu1 %v2140_v30  ;;  %v2137_v46 = vsel %vm329_vm0, %v2135_v29, -inf }
0x1061   :  { %2138 = vmax.xlane.f32.xlu0 %v2137_v46 }
0x10ed   :  { %v2142_v34 = vpop.xlane.xlu1 %2141 }
0x10ee   :  { %v2144_v24 = vsub.f32 %v2136_v23, %v2142_v34  ;;  %v2139_v44 = vpop.xlane.xlu0 %2138 }
0x10ef   :  { %v2143_v38 = vsub.f32 %v2135_v29, %v2139_v44 }
0x10f0   :  { %v2147_v45 = vmul.f32 1.442695, %v2144_v24 }
0x10f1   :  { %v2145_v35 = vmul.f32 1.442695, %v2143_v38 }
0x10f2   :  { %3195 = vpow2.f32 %v2147_v45 }
0x10f3   :  { %3197 = vpow2.f32 %v2145_v35 }
0x10fc   :  { %v3196_v48 = vpop.eup %3195 }
0x10fd   :  { %v3198_v50 = vpop.eup %3197  ;;  %v2152_v1 = vsel %vm329_vm0, %v3196_v48, 0.0 }
0x10fe   :  { %2153 = vadd.xlane.f32.xlu1 %v2152_v1  ;;  %v2149_v15 = vsel %vm329_vm0, %v3198_v50, 0.0 }
0x10ff   :  { %2150 = vadd.xlane.f32.xlu0 %v2149_v15 }
0x118b   :  { %v2154_v26 = vpop.xlane.xlu1 %2153 }
0x118c   :  { %3199 = vrcp.f32 %v2154_v26  ;;  %v2151_v39 = vpop.xlane.xlu0 %2150 }
0x118d   :  { %3201 = vrcp.f32 %v2151_v39 }
0x1196   :  { %v3200_v56 = vpop.eup %3199 }
0x1197   :  { %v3202_v9 = vpop.eup %3201  ;;  %v2158_v40 = vmul.f32 %v3200_v56, %v3196_v48 }
0x1198   :  { %v2157_v57 = vmul.f32 %v3202_v9, %v3198_v50 }
0x119a   :  { %2852 = vmatprep.mubr.msk.f32.mxu0 %vm329_vm0, %v2157_v57 }
0x119b   :  { %2853 = vmatmul.mubr.msk.f32.vlgmr.msra.gmra.mrb[36].mxu0 %vm329_vm0, %v2158_v40 }
0x126e   :  { %v2854_v60 = vpop.f32.mrb[36].mxu0 }
0x126f   :  { %v2239_v54 = vadd.f32 %v2854_v60, %v2160_v59  ;;  %v2233_v61 = vpop.f32.mrb[37].mxu0 }
0x1270   :  { %v2234_v55 = vadd.f32 %v2233_v61, %v2159_v25 }
0x1271   :  { %2244 = vst.msk [vmem:[%s3647_s3 + $0x8] sm:$0xff] %vm2242_vm2, %v2239_v54 }
0x1272   :  { %2243 = vst.msk [vmem:[%s3647_s3] sm:$0xff] %vm2242_vm2, %v2234_v55 }
0x1273   :  { %2249 = vsyncpa [#allocation3], 1 }

</bundles_post_ra>
